<compile_context>
chip_gen: v7x
topology: tpu7x:2x2x1
jax: 0.10.0
libtpu: 0.0.40
codegen_flags: <defaults>
</compile_context>

<pallas_src>
import jax
import jax.numpy as jnp
from jax import lax
from jax.experimental import pallas as pl
from jax.experimental.pallas import tpu as pltpu

# Make wrapper/reference f32 matmuls true f32 so the f32-MXU kernel path can be
# checked at a tight tolerance.
jax.config.update("jax_default_matmul_precision", "highest")


def _sigmoid(z):
    # Plain logistic (exp + divide) -- guaranteed Mosaic lowering, and gate
    # pre-activations here are O(1) so the naive form is numerically fine.
    return 1.0 / (1.0 + jnp.exp(-z))


def prednet_kernel(xp_ref, hc0_ref, wblk_ref, fcb_ref, y_ref, hT_ref, cT_ref):
    """Whole-sequence LSTM recurrence + batched FC in one invocation.

    xp_ref  : (T*Bp, 4H) f32  hoisted input projection x@W_ih^T + (b_ih+b_hh),
                              time-major rows (row = t*Bp + b), Bp = padded batch
    hc0_ref : (2*Bp, H)  f32  rows [0:Bp] = h0, rows [Bp:2Bp] = c0
    wblk_ref: (2*H, W)   MXU dtype; [0:H, 0:4H] = W_hh^T,
                              [H:2H, 0:O_pad] = fc.weight^T (lane-padded)
    fcb_ref : (1, O_pad) f32  fc bias (lane-padded)
    y_ref   : (T*Bp, O_pad) f32   hT_ref / cT_ref : (Bp, H) f32
    """
    Bp, H = hT_ref.shape
    TB, G4 = xp_ref.shape           # G4 = 4H
    T = TB // Bp
    Opad = y_ref.shape[1]
    cdt = wblk_ref.dtype            # dtype fed to the MXU

    wblk = wblk_ref[...]
    w_hh = wblk[0:H, 0:G4]          # (H, 4H)
    fc_w = wblk[H:2 * H, 0:Opad]    # (H, O_pad)

    hc0 = hc0_ref[...]
    h = hc0[0:Bp, :]                # (Bp, H) f32
    c = hc0[Bp:2 * Bp, :]           # (Bp, H) f32

    xp = xp_ref[...]                # (T*Bp, 4H) f32; per-step slices are whole
                                    # aligned 8-sublane x 128-lane vregs.

    hs = []
    # Statically unrolled recurrence: only h @ W_hh^T + elementwise gate math
    # stays on the serial path (input projection was hoisted to the wrapper).
    for t in range(T):
        gates = xp[t * Bp:(t + 1) * Bp, :] + jnp.dot(
            h.astype(cdt), w_hh, preferred_element_type=jnp.float32)  # (Bp,4H) f32
        # PyTorch gate order: i, f, g, o.  Apply sigmoid / tanh to the whole
        # (Bp, 4H) vreg (2 EUP pushes) and slice the results afterwards.
        sg = _sigmoid(gates)
        tg = jnp.tanh(gates)
        i_g = sg[:, 0 * H:1 * H]
        f_g = sg[:, 1 * H:2 * H]
        g_g = tg[:, 2 * H:3 * H]
        o_g = sg[:, 3 * H:4 * H]
        c = f_g * c + i_g * g_g
        h = o_g * jnp.tanh(c)
        hs.append(h)

    # Final hidden state, written once after the loop.
    hT_ref[...] = h.astype(hT_ref.dtype)
    cT_ref[...] = c.astype(cT_ref.dtype)

    # Dropout is identity in eval mode.
    # Batched FC over every timestep: one matmul + one lane-dense store.
    hs_all = jnp.concatenate(hs, axis=0)                    # (T*Bp, H) f32
    y = jnp.dot(hs_all.astype(cdt), fc_w,
                preferred_element_type=jnp.float32) + fcb_ref[...]
    y_ref[...] = y.astype(y_ref.dtype)


def prednet_forward(x, params, hidden=None, mxu_dtype=jnp.bfloat16):
    """x: (B, T, input_size) f32.  Returns (y, (h_n, c_n)) like nn.LSTM + fc."""
    B, T, I = x.shape
    w_ih, w_hh, b_ih, b_hh, fc_w, fc_b = (
        params["w_ih"], params["w_hh"], params["b_ih"], params["b_hh"],
        params["fc_w"], params["fc_b"])
    H = w_hh.shape[1]
    O = fc_w.shape[0]
    Bp = ((B + 7) // 8) * 8              # pad batch to the f32 sublane tile
    Opad = ((O + 127) // 128) * 128      # lane-dense output

    if hidden is None:
        h0 = jnp.zeros((B, H), jnp.float32)
        c0 = jnp.zeros((B, H), jnp.float32)
    else:
        h0 = hidden[0].reshape(B, H).astype(jnp.float32)
        c0 = hidden[1].reshape(B, H).astype(jnp.float32)

    hc0 = jnp.zeros((2 * Bp, H), jnp.float32)
    hc0 = hc0.at[0:B, :].set(h0).at[Bp:Bp + B, :].set(c0)

    # Time-major, batch-padded input rows; hoisted input projection (+ combined
    # bias) done here in plain XLA so the kernel's serial path starts with the
    # first h @ W_hh^T immediately.
    x_tm = jnp.zeros((T, Bp, I), jnp.float32).at[:, :B, :].set(
        jnp.transpose(x, (1, 0, 2)).astype(jnp.float32))
    bias = (b_ih + b_hh).reshape(1, 4 * H).astype(jnp.float32)
    xp = (x_tm.reshape(T * Bp, I) @ jnp.transpose(w_ih).astype(jnp.float32)
          + bias)                                            # (T*Bp, 4H) f32

    # Packed weight block: [W_hh^T ; fc.weight^T (lane-padded)] -> one DMA.
    Wl = max(4 * H, Opad)
    wblk = jnp.zeros((2 * H, Wl), mxu_dtype)
    wblk = wblk.at[0:H, 0:4 * H].set(jnp.transpose(w_hh).astype(mxu_dtype))
    wblk = wblk.at[H:2 * H, 0:O].set(jnp.transpose(fc_w).astype(mxu_dtype))
    fcb = jnp.zeros((1, Opad), jnp.float32).at[0, 0:O].set(fc_b.astype(jnp.float32))

    vmem = pl.BlockSpec(memory_space=pltpu.MemorySpace.VMEM)
    y_pad, hT, cT = pl.pallas_call(
        prednet_kernel,
        out_shape=(
            jax.ShapeDtypeStruct((T * Bp, Opad), jnp.float32),
            jax.ShapeDtypeStruct((Bp, H), jnp.float32),
            jax.ShapeDtypeStruct((Bp, H), jnp.float32),
        ),
        in_specs=[vmem, vmem, vmem, vmem],
        out_specs=(vmem, vmem, vmem),
    )(xp, hc0, wblk, fcb)

    y = jnp.transpose(y_pad.reshape(T, Bp, Opad)[:, :B, :O], (1, 0, 2))  # (B,T,O)
    return y, (hT[:B][None], cT[:B][None])                   # hidden shaped (1,B,H)


def prednet_ref(x, params, hidden=None):
    """Pure-JAX reference mirroring torch's nn.LSTM(batch_first) + Linear (eval)."""
    B, T, I = x.shape
    w_ih, w_hh, b_ih, b_hh, fc_w, fc_b = (
        params["w_ih"], params["w_hh"], params["b_ih"], params["b_hh"],
        params["fc_w"], params["fc_b"])
    H = w_hh.shape[1]
    if hidden is None:
        h0 = jnp.zeros((B, H), jnp.float32)
        c0 = jnp.zeros((B, H), jnp.float32)
    else:
        h0, c0 = hidden[0].reshape(B, H), hidden[1].reshape(B, H)

    def step(carry, x_t):
        h, c = carry
        gates = x_t @ w_ih.T + h @ w_hh.T + b_ih + b_hh
        i_g = _sigmoid(gates[:, 0 * H:1 * H])
        f_g = _sigmoid(gates[:, 1 * H:2 * H])
        g_g = jnp.tanh(gates[:, 2 * H:3 * H])
        o_g = _sigmoid(gates[:, 3 * H:4 * H])
        c_new = f_g * c + i_g * g_g
        h_new = o_g * jnp.tanh(c_new)
        return (h_new, c_new), h_new

    (hT, cT), hs = lax.scan(step, (h0, c0), jnp.transpose(x, (1, 0, 2)))
    y = jnp.einsum("tbh,oh->tbo", hs, fc_w) + fc_b
    return jnp.transpose(y, (1, 0, 2)), (hT[None], cT[None])


def init_params(key, input_size, hidden_size, output_size):
    ks = jax.random.split(key, 6)
    s = 1.0 / jnp.sqrt(hidden_size)
    return {
        "w_ih": jax.random.uniform(ks[0], (4 * hidden_size, input_size), jnp.float32, -s, s),
        "w_hh": jax.random.uniform(ks[1], (4 * hidden_size, hidden_size), jnp.float32, -s, s),
        "b_ih": jax.random.uniform(ks[2], (4 * hidden_size,), jnp.float32, -s, s),
        "b_hh": jax.random.uniform(ks[3], (4 * hidden_size,), jnp.float32, -s, s),
        "fc_w": jax.random.uniform(ks[4], (output_size, hidden_size), jnp.float32, -s, s),
        "fc_b": jax.random.uniform(ks[5], (output_size,), jnp.float32, -s, s),
    }


if __name__ == "__main__":
    B, T, input_size, hidden_size, output_size = 2, 8, 4, 32, 4

    key = jax.random.PRNGKey(0)
    kx, kp = jax.random.split(key)
    x = jax.random.normal(kx, (B, T, input_size), jnp.float32)
    params = init_params(kp, input_size, hidden_size, output_size)

    y_ref, (h_ref, c_ref) = prednet_ref(x, params)

    # 1) Full-f32 MXU path: tight structural check against the reference.
    y32, (h32, c32) = prednet_forward(x, params, mxu_dtype=jnp.float32)
    jax.block_until_ready((y32, h32, c32))
    assert y32.shape == (B, T, output_size)
    assert h32.shape == (1, B, hidden_size) and c32.shape == (1, B, hidden_size)
    assert jnp.allclose(y32, y_ref, atol=1e-3, rtol=1e-3)
    assert jnp.allclose(h32, h_ref, atol=1e-3, rtol=1e-3)
    assert jnp.allclose(c32, c_ref, atol=1e-3, rtol=1e-3)

    # 2) Default bf16-MXU / f32-accumulate path (loosened tolerance).
    y, (h_n, c_n) = prednet_forward(x, params)
    jax.block_until_ready((y, h_n, c_n))
    assert jnp.allclose(y, y_ref, atol=3e-2, rtol=3e-2)
    assert jnp.allclose(h_n, h_ref, atol=3e-2, rtol=3e-2)
    assert jnp.allclose(c_n, c_ref, atol=3e-2, rtol=3e-2)

    print("KERNEL_OK")
</pallas_src>

<mosaic_0001>
module attributes {stable_mosaic.version = 11 : i64} {
  func.func @prednet_kernel(%arg0: memref<64x128xf32, #tpu.memory_space<vmem>>, %arg1: memref<16x32xf32, #tpu.memory_space<vmem>>, %arg2: memref<64x128xf32, #tpu.memory_space<vmem>>, %arg3: memref<1x128xf32, #tpu.memory_space<vmem>>, %arg4: memref<64x128xf32, #tpu.memory_space<vmem>>, %arg5: memref<8x32xf32, #tpu.memory_space<vmem>>, %arg6: memref<8x32xf32, #tpu.memory_space<vmem>>) attributes {dimension_semantics = [], scalar_prefetch = 0 : i64, scratch_operands = 0 : i64, tpu.core_type = #tpu.core_type<tc>} {
    %c0 = arith.constant 0 : index
    %c0_0 = arith.constant 0 : index
    %0 = vector.load %arg2[%c0, %c0_0] : memref<64x128xf32, #tpu.memory_space<vmem>>, vector<64x128xf32>
    %1 = vector.extract_strided_slice %0 {offsets = [0, 0], sizes = [32, 128], strides = [1, 1]} : vector<64x128xf32> to vector<32x128xf32>
    %2 = vector.extract_strided_slice %0 {offsets = [32, 0], sizes = [32, 128], strides = [1, 1]} : vector<64x128xf32> to vector<32x128xf32>
    %c0_1 = arith.constant 0 : index
    %c0_2 = arith.constant 0 : index
    %3 = vector.load %arg1[%c0_1, %c0_2] : memref<16x32xf32, #tpu.memory_space<vmem>>, vector<16x32xf32>
    %4 = vector.extract_strided_slice %3 {offsets = [0, 0], sizes = [8, 32], strides = [1, 1]} : vector<16x32xf32> to vector<8x32xf32>
    %5 = vector.extract_strided_slice %3 {offsets = [8, 0], sizes = [8, 32], strides = [1, 1]} : vector<16x32xf32> to vector<8x32xf32>
    %c0_3 = arith.constant 0 : index
    %c0_4 = arith.constant 0 : index
    %6 = vector.load %arg0[%c0_3, %c0_4] : memref<64x128xf32, #tpu.memory_space<vmem>>, vector<64x128xf32>
    %7 = vector.extract_strided_slice %6 {offsets = [0, 0], sizes = [8, 128], strides = [1, 1]} : vector<64x128xf32> to vector<8x128xf32>
    %cst = arith.constant dense<0.000000e+00> : vector<8x128xf32>
    %8 = tpu.matmul %4, %1, %cst {dimension_numbers = #tpu.dot_dimension_numbers<[1], [0], [0], [1], [0, 0, 1, 1], [], []>, precision = #tpu.contract_precision<fp32>} : vector<8x32xf32>, vector<32x128xf32>, vector<8x128xf32> -> vector<8x128xf32>
    %9 = arith.addf %7, %8 : vector<8x128xf32>
    %cst_5 = arith.constant 0.000000e+00 : f32
    %10 = vector.broadcast %cst_5 : f32 to vector<8x128xf32>
    %11 = arith.subf %10, %9 : vector<8x128xf32>
    %12 = math.exp %11 : vector<8x128xf32>
    %cst_6 = arith.constant 1.000000e+00 : f32
    %13 = vector.broadcast %cst_6 : f32 to vector<8x128xf32>
    %14 = arith.addf %13, %12 : vector<8x128xf32>
    %cst_7 = arith.constant 1.000000e+00 : f32
    %15 = vector.broadcast %cst_7 : f32 to vector<8x128xf32>
    %16 = arith.divf %15, %14 : vector<8x128xf32>
    %17 = math.tanh %9 : vector<8x128xf32>
    %18 = vector.extract_strided_slice %16 {offsets = [0, 0], sizes = [8, 32], strides = [1, 1]} : vector<8x128xf32> to vector<8x32xf32>
    %19 = vector.extract_strided_slice %16 {offsets = [0, 32], sizes = [8, 32], strides = [1, 1]} : vector<8x128xf32> to vector<8x32xf32>
    %20 = vector.extract_strided_slice %17 {offsets = [0, 64], sizes = [8, 32], strides = [1, 1]} : vector<8x128xf32> to vector<8x32xf32>
    %21 = vector.extract_strided_slice %16 {offsets = [0, 96], sizes = [8, 32], strides = [1, 1]} : vector<8x128xf32> to vector<8x32xf32>
    %22 = arith.mulf %19, %5 : vector<8x32xf32>
    %23 = arith.mulf %18, %20 : vector<8x32xf32>
    %24 = arith.addf %22, %23 : vector<8x32xf32>
    %25 = math.tanh %24 : vector<8x32xf32>
    %26 = arith.mulf %21, %25 : vector<8x32xf32>
    %27 = vector.extract_strided_slice %6 {offsets = [8, 0], sizes = [8, 128], strides = [1, 1]} : vector<64x128xf32> to vector<8x128xf32>
    %cst_8 = arith.constant dense<0.000000e+00> : vector<8x128xf32>
    %28 = tpu.matmul %26, %1, %cst_8 {dimension_numbers = #tpu.dot_dimension_numbers<[1], [0], [0], [1], [0, 0, 1, 1], [], []>, precision = #tpu.contract_precision<fp32>} : vector<8x32xf32>, vector<32x128xf32>, vector<8x128xf32> -> vector<8x128xf32>
    %29 = arith.addf %27, %28 : vector<8x128xf32>
    %cst_9 = arith.constant 0.000000e+00 : f32
    %30 = vector.broadcast %cst_9 : f32 to vector<8x128xf32>
    %31 = arith.subf %30, %29 : vector<8x128xf32>
    %32 = math.exp %31 : vector<8x128xf32>
    %cst_10 = arith.constant 1.000000e+00 : f32
    %33 = vector.broadcast %cst_10 : f32 to vector<8x128xf32>
    %34 = arith.addf %33, %32 : vector<8x128xf32>
    %cst_11 = arith.constant 1.000000e+00 : f32
    %35 = vector.broadcast %cst_11 : f32 to vector<8x128xf32>
    %36 = arith.divf %35, %34 : vector<8x128xf32>
    %37 = math.tanh %29 : vector<8x128xf32>
    %38 = vector.extract_strided_slice %36 {offsets = [0, 0], sizes = [8, 32], strides = [1, 1]} : vector<8x128xf32> to vector<8x32xf32>
    %39 = vector.extract_strided_slice %36 {offsets = [0, 32], sizes = [8, 32], strides = [1, 1]} : vector<8x128xf32> to vector<8x32xf32>
    %40 = vector.extract_strided_slice %37 {offsets = [0, 64], sizes = [8, 32], strides = [1, 1]} : vector<8x128xf32> to vector<8x32xf32>
    %41 = vector.extract_strided_slice %36 {offsets = [0, 96], sizes = [8, 32], strides = [1, 1]} : vector<8x128xf32> to vector<8x32xf32>
    %42 = arith.mulf %39, %24 : vector<8x32xf32>
    %43 = arith.mulf %38, %40 : vector<8x32xf32>
    %44 = arith.addf %42, %43 : vector<8x32xf32>
    %45 = math.tanh %44 : vector<8x32xf32>
    %46 = arith.mulf %41, %45 : vector<8x32xf32>
    %47 = vector.extract_strided_slice %6 {offsets = [16, 0], sizes = [8, 128], strides = [1, 1]} : vector<64x128xf32> to vector<8x128xf32>
    %cst_12 = arith.constant dense<0.000000e+00> : vector<8x128xf32>
    %48 = tpu.matmul %46, %1, %cst_12 {dimension_numbers = #tpu.dot_dimension_numbers<[1], [0], [0], [1], [0, 0, 1, 1], [], []>, precision = #tpu.contract_precision<fp32>} : vector<8x32xf32>, vector<32x128xf32>, vector<8x128xf32> -> vector<8x128xf32>
    %49 = arith.addf %47, %48 : vector<8x128xf32>
    %cst_13 = arith.constant 0.000000e+00 : f32
    %50 = vector.broadcast %cst_13 : f32 to vector<8x128xf32>
    %51 = arith.subf %50, %49 : vector<8x128xf32>
    %52 = math.exp %51 : vector<8x128xf32>
    %cst_14 = arith.constant 1.000000e+00 : f32
    %53 = vector.broadcast %cst_14 : f32 to vector<8x128xf32>
    %54 = arith.addf %53, %52 : vector<8x128xf32>
    %cst_15 = arith.constant 1.000000e+00 : f32
    %55 = vector.broadcast %cst_15 : f32 to vector<8x128xf32>
    %56 = arith.divf %55, %54 : vector<8x128xf32>
    %57 = math.tanh %49 : vector<8x128xf32>
    %58 = vector.extract_strided_slice %56 {offsets = [0, 0], sizes = [8, 32], strides = [1, 1]} : vector<8x128xf32> to vector<8x32xf32>
    %59 = vector.extract_strided_slice %56 {offsets = [0, 32], sizes = [8, 32], strides = [1, 1]} : vector<8x128xf32> to vector<8x32xf32>
    %60 = vector.extract_strided_slice %57 {offsets = [0, 64], sizes = [8, 32], strides = [1, 1]} : vector<8x128xf32> to vector<8x32xf32>
    %61 = vector.extract_strided_slice %56 {offsets = [0, 96], sizes = [8, 32], strides = [1, 1]} : vector<8x128xf32> to vector<8x32xf32>
    %62 = arith.mulf %59, %44 : vector<8x32xf32>
    %63 = arith.mulf %58, %60 : vector<8x32xf32>
    %64 = arith.addf %62, %63 : vector<8x32xf32>
    %65 = math.tanh %64 : vector<8x32xf32>
    %66 = arith.mulf %61, %65 : vector<8x32xf32>
    %67 = vector.extract_strided_slice %6 {offsets = [24, 0], sizes = [8, 128], strides = [1, 1]} : vector<64x128xf32> to vector<8x128xf32>
    %cst_16 = arith.constant dense<0.000000e+00> : vector<8x128xf32>
    %68 = tpu.matmul %66, %1, %cst_16 {dimension_numbers = #tpu.dot_dimension_numbers<[1], [0], [0], [1], [0, 0, 1, 1], [], []>, precision = #tpu.contract_precision<fp32>} : vector<8x32xf32>, vector<32x128xf32>, vector<8x128xf32> -> vector<8x128xf32>
    %69 = arith.addf %67, %68 : vector<8x128xf32>
    %cst_17 = arith.constant 0.000000e+00 : f32
    %70 = vector.broadcast %cst_17 : f32 to vector<8x128xf32>
    %71 = arith.subf %70, %69 : vector<8x128xf32>
    %72 = math.exp %71 : vector<8x128xf32>
    %cst_18 = arith.constant 1.000000e+00 : f32
    %73 = vector.broadcast %cst_18 : f32 to vector<8x128xf32>
    %74 = arith.addf %73, %72 : vector<8x128xf32>
    %cst_19 = arith.constant 1.000000e+00 : f32
    %75 = vector.broadcast %cst_19 : f32 to vector<8x128xf32>
    %76 = arith.divf %75, %74 : vector<8x128xf32>
    %77 = math.tanh %69 : vector<8x128xf32>
    %78 = vector.extract_strided_slice %76 {offsets = [0, 0], sizes = [8, 32], strides = [1, 1]} : vector<8x128xf32> to vector<8x32xf32>
    %79 = vector.extract_strided_slice %76 {offsets = [0, 32], sizes = [8, 32], strides = [1, 1]} : vector<8x128xf32> to vector<8x32xf32>
    %80 = vector.extract_strided_slice %77 {offsets = [0, 64], sizes = [8, 32], strides = [1, 1]} : vector<8x128xf32> to vector<8x32xf32>
    %81 = vector.extract_strided_slice %76 {offsets = [0, 96], sizes = [8, 32], strides = [1, 1]} : vector<8x128xf32> to vector<8x32xf32>
    %82 = arith.mulf %79, %64 : vector<8x32xf32>
    %83 = arith.mulf %78, %80 : vector<8x32xf32>
    %84 = arith.addf %82, %83 : vector<8x32xf32>
    %85 = math.tanh %84 : vector<8x32xf32>
    %86 = arith.mulf %81, %85 : vector<8x32xf32>
    %87 = vector.extract_strided_slice %6 {offsets = [32, 0], sizes = [8, 128], strides = [1, 1]} : vector<64x128xf32> to vector<8x128xf32>
    %cst_20 = arith.constant dense<0.000000e+00> : vector<8x128xf32>
    %88 = tpu.matmul %86, %1, %cst_20 {dimension_numbers = #tpu.dot_dimension_numbers<[1], [0], [0], [1], [0, 0, 1, 1], [], []>, precision = #tpu.contract_precision<fp32>} : vector<8x32xf32>, vector<32x128xf32>, vector<8x128xf32> -> vector<8x128xf32>
    %89 = arith.addf %87, %88 : vector<8x128xf32>
    %cst_21 = arith.constant 0.000000e+00 : f32
    %90 = vector.broadcast %cst_21 : f32 to vector<8x128xf32>
    %91 = arith.subf %90, %89 : vector<8x128xf32>
    %92 = math.exp %91 : vector<8x128xf32>
    %cst_22 = arith.constant 1.000000e+00 : f32
    %93 = vector.broadcast %cst_22 : f32 to vector<8x128xf32>
    %94 = arith.addf %93, %92 : vector<8x128xf32>
    %cst_23 = arith.constant 1.000000e+00 : f32
    %95 = vector.broadcast %cst_23 : f32 to vector<8x128xf32>
    %96 = arith.divf %95, %94 : vector<8x128xf32>
    %97 = math.tanh %89 : vector<8x128xf32>
    %98 = vector.extract_strided_slice %96 {offsets = [0, 0], sizes = [8, 32], strides = [1, 1]} : vector<8x128xf32> to vector<8x32xf32>
    %99 = vector.extract_strided_slice %96 {offsets = [0, 32], sizes = [8, 32], strides = [1, 1]} : vector<8x128xf32> to vector<8x32xf32>
    %100 = vector.extract_strided_slice %97 {offsets = [0, 64], sizes = [8, 32], strides = [1, 1]} : vector<8x128xf32> to vector<8x32xf32>
    %101 = vector.extract_strided_slice %96 {offsets = [0, 96], sizes = [8, 32], strides = [1, 1]} : vector<8x128xf32> to vector<8x32xf32>
    %102 = arith.mulf %99, %84 : vector<8x32xf32>
    %103 = arith.mulf %98, %100 : vector<8x32xf32>
    %104 = arith.addf %102, %103 : vector<8x32xf32>
    %105 = math.tanh %104 : vector<8x32xf32>
    %106 = arith.mulf %101, %105 : vector<8x32xf32>
    %107 = vector.extract_strided_slice %6 {offsets = [40, 0], sizes = [8, 128], strides = [1, 1]} : vector<64x128xf32> to vector<8x128xf32>
    %cst_24 = arith.constant dense<0.000000e+00> : vector<8x128xf32>
    %108 = tpu.matmul %106, %1, %cst_24 {dimension_numbers = #tpu.dot_dimension_numbers<[1], [0], [0], [1], [0, 0, 1, 1], [], []>, precision = #tpu.contract_precision<fp32>} : vector<8x32xf32>, vector<32x128xf32>, vector<8x128xf32> -> vector<8x128xf32>
    %109 = arith.addf %107, %108 : vector<8x128xf32>
    %cst_25 = arith.constant 0.000000e+00 : f32
    %110 = vector.broadcast %cst_25 : f32 to vector<8x128xf32>
    %111 = arith.subf %110, %109 : vector<8x128xf32>
    %112 = math.exp %111 : vector<8x128xf32>
    %cst_26 = arith.constant 1.000000e+00 : f32
    %113 = vector.broadcast %cst_26 : f32 to vector<8x128xf32>
    %114 = arith.addf %113, %112 : vector<8x128xf32>
    %cst_27 = arith.constant 1.000000e+00 : f32
    %115 = vector.broadcast %cst_27 : f32 to vector<8x128xf32>
    %116 = arith.divf %115, %114 : vector<8x128xf32>
    %117 = math.tanh %109 : vector<8x128xf32>
    %118 = vector.extract_strided_slice %116 {offsets = [0, 0], sizes = [8, 32], strides = [1, 1]} : vector<8x128xf32> to vector<8x32xf32>
    %119 = vector.extract_strided_slice %116 {offsets = [0, 32], sizes = [8, 32], strides = [1, 1]} : vector<8x128xf32> to vector<8x32xf32>
    %120 = vector.extract_strided_slice %117 {offsets = [0, 64], sizes = [8, 32], strides = [1, 1]} : vector<8x128xf32> to vector<8x32xf32>
    %121 = vector.extract_strided_slice %116 {offsets = [0, 96], sizes = [8, 32], strides = [1, 1]} : vector<8x128xf32> to vector<8x32xf32>
    %122 = arith.mulf %119, %104 : vector<8x32xf32>
    %123 = arith.mulf %118, %120 : vector<8x32xf32>
    %124 = arith.addf %122, %123 : vector<8x32xf32>
    %125 = math.tanh %124 : vector<8x32xf32>
    %126 = arith.mulf %121, %125 : vector<8x32xf32>
    %127 = vector.extract_strided_slice %6 {offsets = [48, 0], sizes = [8, 128], strides = [1, 1]} : vector<64x128xf32> to vector<8x128xf32>
    %cst_28 = arith.constant dense<0.000000e+00> : vector<8x128xf32>
    %128 = tpu.matmul %126, %1, %cst_28 {dimension_numbers = #tpu.dot_dimension_numbers<[1], [0], [0], [1], [0, 0, 1, 1], [], []>, precision = #tpu.contract_precision<fp32>} : vector<8x32xf32>, vector<32x128xf32>, vector<8x128xf32> -> vector<8x128xf32>
    %129 = arith.addf %127, %128 : vector<8x128xf32>
    %cst_29 = arith.constant 0.000000e+00 : f32
    %130 = vector.broadcast %cst_29 : f32 to vector<8x128xf32>
    %131 = arith.subf %130, %129 : vector<8x128xf32>
    %132 = math.exp %131 : vector<8x128xf32>
    %cst_30 = arith.constant 1.000000e+00 : f32
    %133 = vector.broadcast %cst_30 : f32 to vector<8x128xf32>
    %134 = arith.addf %133, %132 : vector<8x128xf32>
    %cst_31 = arith.constant 1.000000e+00 : f32
    %135 = vector.broadcast %cst_31 : f32 to vector<8x128xf32>
    %136 = arith.divf %135, %134 : vector<8x128xf32>
    %137 = math.tanh %129 : vector<8x128xf32>
    %138 = vector.extract_strided_slice %136 {offsets = [0, 0], sizes = [8, 32], strides = [1, 1]} : vector<8x128xf32> to vector<8x32xf32>
    %139 = vector.extract_strided_slice %136 {offsets = [0, 32], sizes = [8, 32], strides = [1, 1]} : vector<8x128xf32> to vector<8x32xf32>
    %140 = vector.extract_strided_slice %137 {offsets = [0, 64], sizes = [8, 32], strides = [1, 1]} : vector<8x128xf32> to vector<8x32xf32>
    %141 = vector.extract_strided_slice %136 {offsets = [0, 96], sizes = [8, 32], strides = [1, 1]} : vector<8x128xf32> to vector<8x32xf32>
    %142 = arith.mulf %139, %124 : vector<8x32xf32>
    %143 = arith.mulf %138, %140 : vector<8x32xf32>
    %144 = arith.addf %142, %143 : vector<8x32xf32>
    %145 = math.tanh %144 : vector<8x32xf32>
    %146 = arith.mulf %141, %145 : vector<8x32xf32>
    %147 = vector.extract_strided_slice %6 {offsets = [56, 0], sizes = [8, 128], strides = [1, 1]} : vector<64x128xf32> to vector<8x128xf32>
    %cst_32 = arith.constant dense<0.000000e+00> : vector<8x128xf32>
    %148 = tpu.matmul %146, %1, %cst_32 {dimension_numbers = #tpu.dot_dimension_numbers<[1], [0], [0], [1], [0, 0, 1, 1], [], []>, precision = #tpu.contract_precision<fp32>} : vector<8x32xf32>, vector<32x128xf32>, vector<8x128xf32> -> vector<8x128xf32>
    %149 = arith.addf %147, %148 : vector<8x128xf32>
    %cst_33 = arith.constant 0.000000e+00 : f32
    %150 = vector.broadcast %cst_33 : f32 to vector<8x128xf32>
    %151 = arith.subf %150, %149 : vector<8x128xf32>
    %152 = math.exp %151 : vector<8x128xf32>
    %cst_34 = arith.constant 1.000000e+00 : f32
    %153 = vector.broadcast %cst_34 : f32 to vector<8x128xf32>
    %154 = arith.addf %153, %152 : vector<8x128xf32>
    %cst_35 = arith.constant 1.000000e+00 : f32
    %155 = vector.broadcast %cst_35 : f32 to vector<8x128xf32>
    %156 = arith.divf %155, %154 : vector<8x128xf32>
    %157 = math.tanh %149 : vector<8x128xf32>
    %158 = vector.extract_strided_slice %156 {offsets = [0, 0], sizes = [8, 32], strides = [1, 1]} : vector<8x128xf32> to vector<8x32xf32>
    %159 = vector.extract_strided_slice %156 {offsets = [0, 32], sizes = [8, 32], strides = [1, 1]} : vector<8x128xf32> to vector<8x32xf32>
    %160 = vector.extract_strided_slice %157 {offsets = [0, 64], sizes = [8, 32], strides = [1, 1]} : vector<8x128xf32> to vector<8x32xf32>
    %161 = vector.extract_strided_slice %156 {offsets = [0, 96], sizes = [8, 32], strides = [1, 1]} : vector<8x128xf32> to vector<8x32xf32>
    %162 = arith.mulf %159, %144 : vector<8x32xf32>
    %163 = arith.mulf %158, %160 : vector<8x32xf32>
    %164 = arith.addf %162, %163 : vector<8x32xf32>
    %165 = math.tanh %164 : vector<8x32xf32>
    %166 = arith.mulf %161, %165 : vector<8x32xf32>
    %c0_36 = arith.constant 0 : index
    %c0_37 = arith.constant 0 : index
    %167 = vector.load %arg5[%c0_36, %c0_37] : memref<8x32xf32, #tpu.memory_space<vmem>>, vector<8x32xf32>
    tpu.vector_store %arg5[%c0_36, %c0_37], %166 {strides = array<i32>} : memref<8x32xf32, #tpu.memory_space<vmem>>, vector<8x32xf32>,
    %c0_38 = arith.constant 0 : index
    %c0_39 = arith.constant 0 : index
    %168 = vector.load %arg6[%c0_38, %c0_39] : memref<8x32xf32, #tpu.memory_space<vmem>>, vector<8x32xf32>
    tpu.vector_store %arg6[%c0_38, %c0_39], %164 {strides = array<i32>} : memref<8x32xf32, #tpu.memory_space<vmem>>, vector<8x32xf32>,
    %169 = tpu.concatenate %26, %46, %66, %86, %106, %126, %146, %166 in 0 : vector<8x32xf32>, vector<8x32xf32>, vector<8x32xf32>, vector<8x32xf32>, vector<8x32xf32>, vector<8x32xf32>, vector<8x32xf32>, vector<8x32xf32> -> vector<64x32xf32>
    %cst_40 = arith.constant dense<0.000000e+00> : vector<64x128xf32>
    %170 = tpu.matmul %169, %2, %cst_40 {dimension_numbers = #tpu.dot_dimension_numbers<[1], [0], [0], [1], [0, 0, 1, 1], [], []>, precision = #tpu.contract_precision<fp32>} : vector<64x32xf32>, vector<32x128xf32>, vector<64x128xf32> -> vector<64x128xf32>
    %c0_41 = arith.constant 0 : index
    %c0_42 = arith.constant 0 : index
    %171 = vector.load %arg3[%c0_41, %c0_42] : memref<1x128xf32, #tpu.memory_space<vmem>>, vector<1x128xf32>
    %172 = vector.broadcast %171 : vector<1x128xf32> to vector<64x128xf32>
    %173 = arith.addf %170, %172 : vector<64x128xf32>
    %c0_43 = arith.constant 0 : index
    %c0_44 = arith.constant 0 : index
    %174 = vector.load %arg4[%c0_43, %c0_44] : memref<64x128xf32, #tpu.memory_space<vmem>>, vector<64x128xf32>
    tpu.vector_store %arg4[%c0_43, %c0_44], %173 {strides = array<i32>} : memref<64x128xf32, #tpu.memory_space<vmem>>, vector<64x128xf32>,
    return
  }
}

</mosaic_0001>

<bundles_post_ra>
// kernel: tpu_custom_call.1
= control target key start
LH: loop header
LB: loop body
LE: loop exit
PB: predicated region body
PF: predicated region fallthrough
CT: control target
= control target key end

     0   :  { %12 = vsyncpa [#allocation3], 0  ;;  %s7351_s0 = inlined_call_operand.hbm [shape: f32[64,128], index: 0, kind: input, shape index: {}]   ;;  %s7352_s1 = inlined_call_operand.hbm [shape: f32[16,32], index: 1, kind: input, shape index: {}]   ;;  %s7353_s2 = inlined_call_operand.hbm [shape: f32[64,128], index: 2, kind: input, shape index: {}]   ;;  %s7354_s3 = inlined_call_operand.vmem [shape: f32[1,128], index: 3, kind: input, shape index: {}]   ;;  %s7355_s4 = inlined_call_operand.hbm [shape: f32[64,128], index: 4, kind: output, shape index: {0}]   ;;  %s7356_s5 = inlined_call_operand.hbm [shape: f32[8,32], index: 5, kind: output, shape index: {1}]   ;;  %s7357_s6 = inlined_call_operand.hbm [shape: f32[8,32], index: 6, kind: output, shape index: {2}]  }
   0x1   :  { %13 = vsyncpa [#allocation6], 0 }
   0x2   :  { %14 = vsyncpa [#allocation4], 0 }
   0x3   :  { %15 = vsyncpa [#allocation10], 0  ;;  %s6625_s21 = smov [#allocation5]   ;;  %s6626_s23 = smov [#allocation2]  }
   0x4   :  { %s33_s22 = sshll.u32 %s6625_s21, 4  ;;  %s21_s24 = sshll.u32 %s6626_s23, 4  ;;  %s34_s22 = int_to_ptr.vmem [resolvable:$true] %s33_s22  ;;  %s6674_s24 = int_to_ptr.vmem [resolvable:$true] %s21_s24 }
   0x5   :  { %s6485_s27 = scalar_lea.hbm %s7352_s1, 256 }
   0x6   :  { %p6486_p0 = scmp.ne.s32.totalorder %s7352_s1, %s6485_s27  ;;  %p6489_p1 = scmp.lt.u32.totalorder %s6485_s27, %s7352_s1 }
   0x8   :  { %p6491_p2 = pnand %p6489_p1, %p6486_p0 }
   0xa   :  { %6494 = shalt.err (!%p6491_p2)
}
   0xb   :  { %s6495_s8 = scalar_lea.vmem %s34_s22, 256  ;;  %p6500_p4 = scmp.lt.s32.totalorder %s34_s22, %s34_s22 }
   0xc   :  { %p6496_p3 = scmp.ne.s32.totalorder %s34_s22, %s6495_s8  ;;  %p6501_p5 = scmp.lt.s32.totalorder %s6495_s8, %s6495_s8 }
   0xe   :  { %p6502_p6 = por %p6501_p5, %p6500_p4 }
  0x10   :  { %p6503_p7 = pnand %p6502_p6, %p6496_p3 }
  0x12   :  { %6506 = shalt.err (!%p6503_p7)
}
  0x13   :  { %s6627_s9 = smov 128   ;;  %s6628_s10 = smov 8  }
  0x14   :  { %39 = dma.hbm_to_vmem [thread:$0]  %s7352_s1, 256, %s34_s22, [#allocation6], %s6627_s9, %s6627_s9, %s6628_s10  }
  0x15   :  { %s6507_s15 = scalar_lea.hbm %s7351_s0, 1024 }
  0x16   :  { %p6508_p8 = scmp.ne.s32.totalorder %s7351_s0, %s6507_s15  ;;  %p6511_p9 = scmp.lt.u32.totalorder %s6507_s15, %s7351_s0 }
  0x18   :  { %p6513_p10 = pnand %p6511_p9, %p6508_p8 }
  0x1a   :  { %6516 = shalt.err (!%p6513_p10)
}
  0x1b   :  { %s6517_s20 = scalar_lea.vmem %s6674_s24, 1024  ;;  %p6522_p12 = scmp.lt.s32.totalorder %s6674_s24, %s6674_s24 }
  0x1c   :  { %p6518_p11 = scmp.ne.s32.totalorder %s6674_s24, %s6517_s20  ;;  %p6523_p13 = scmp.lt.s32.totalorder %s6517_s20, %s6517_s20 }
  0x1e   :  { %p6524_p0 = por %p6523_p13, %p6522_p12 }
  0x20   :  { %p6525_p1 = pnand %p6524_p0, %p6518_p11 }
  0x22   :  { %6528 = shalt.err (!%p6525_p1)
}
  0x23   :  { %27 = dma.hbm_to_vmem [thread:$0]  %s7351_s0, 1024, %s6674_s24, [#allocation3], %s6627_s9, %s6627_s9, %s6628_s10  }
  0x24   :  { %s6629_s22 = smov [#allocation7]   ;;  %s6529_s27 = scalar_lea.hbm %s7353_s2, 1024 }
  0x25   :  { %s45_s23 = sshll.u32 %s6629_s22, 4  ;;  %p6530_p2 = scmp.ne.s32.totalorder %s7353_s2, %s6529_s27  ;;  %s46_s23 = int_to_ptr.vmem [resolvable:$true] %s45_s23 }
  0x26   :  { %p6533_p3 = scmp.lt.u32.totalorder %s6529_s27, %s7353_s2 }
  0x28   :  { %p6535_p4 = pnand %p6533_p3, %p6530_p2 }
  0x2a   :  { %6538 = shalt.err (!%p6535_p4)
}
  0x2b   :  { %s6539_s8 = scalar_lea.vmem %s46_s23, 1024  ;;  %p6544_p6 = scmp.lt.s32.totalorder %s46_s23, %s46_s23 }
  0x2c   :  { %p6540_p5 = scmp.ne.s32.totalorder %s46_s23, %s6539_s8  ;;  %p6545_p7 = scmp.lt.s32.totalorder %s6539_s8, %s6539_s8 }
  0x2e   :  { %p6546_p8 = por %p6545_p7, %p6544_p6 }
  0x30   :  { %p6547_p9 = pnand %p6546_p8, %p6540_p5 }
  0x32   :  { %6550 = shalt.err (!%p6547_p9)
}
  0x33   :  { %51 = dma.hbm_to_vmem [thread:$0]  %s7353_s2, 1024, %s46_s23, [#allocation6], %s6627_s9, %s6627_s9, %s6628_s10  }
  0x34   :  { %6617 = dma.done.wait [#allocation3], 1024  }
  0x35   :  { %6618 = vsyncadd [#allocation3], 4294966272 }
  0x36   :  { %6619 = dma.done.wait [#allocation6], 1280  }
  0x37   :  { %6620 = vsyncadd [#allocation6], 4294966016  ;;  %v6630_v0 = vmov 0.0|0.0   ;;  %vm6631_vm0 = vmmov 0   ;;  %v6632_v1 = vmov 0.0   ;;  %vm81_vm1 = vcmask 261120  }
  0x38   :  { %6023 = vmatprep.subr.bf16.mxu0 %v6630_v0  ;;  %6029 = vmatprep.subr.bf16.mxu1 %v6630_v0  ;;  %v63_v2 = vld [vmem:[#allocation7] sm:$0xff]  ;;  %v64_v3 = vld [vmem:[#allocation7 + $0x8] sm:$0xff]  ;;  %v65_v4 = vld [vmem:[#allocation7 + $0x10] sm:$0xff]  ;;  %s6633_s2 = smov 64   ;;  %s6634_s11 = smov 32  }
  0x39   :  { %5383 = vmatprep.mubr.msk.f32.mxu0 %vm6631_vm0, %v6632_v1  ;;  %5394 = vmatprep.mubr.msk.f32.mxu1 %vm6631_vm0, %v6632_v1  ;;  %v86_v5 = vand.u32 4294901760, %v63_v2  ;;  %v89_v6 = vand.u32 4294901760, %v64_v3  ;;  %v66_v7 = vld [vmem:[#allocation7 + $0x18] sm:$0xff]  ;;  %v92_v8 = vand.u32 4294901760, %v65_v4  ;;  %v71_v9 = vld [vmem:[#allocation5] sm:$0xff]  ;;  %s6635_s12 = smov 96  }
  0x3a   :  { %v95_v10 = vand.u32 4294901760, %v66_v7  ;;  %v83_v11 = vsel %vm81_vm1, %v71_v9, 0  ;;  %v73_v55 = vld [vmem:[#allocation2] sm:$0xff]  ;;  %v72_v61 = vld [vmem:[#allocation5 + $0x8] sm:$0xff]  ;;  %s6636_s13 = smov [#allocation9]  }
  0x3b   :  { %v6733_v12 = vpack.c.bf16 %v89_v6, %v86_v5  ;;  %v166_v13 = vsub.f32 %v63_v2, %v86_v5  ;;  %v173_v14 = vsub.f32 %v64_v3, %v89_v6  ;;  %v154_v15 = vand.u32 4294901760, %v83_v11  ;;  %s5035_s14 = sshll.u32 %s6636_s13, 4  ;;  %s5036_s14 = int_to_ptr.vmem [resolvable:$true] %s5035_s14 }
  0x3c   :  { %v180_v16 = vsub.f32 %v65_v4, %v92_v8  ;;  %v187_v17 = vsub.f32 %v66_v7, %v95_v10  ;;  %v6736_v18 = vpack.c.bf16 %v95_v10, %v92_v8  ;;  %s6551_s15 = scalar_lea.vmem %s5036_s14, 128  ;;  %p6556_p11 = scmp.lt.s32.totalorder %s5036_s14, %s5036_s14 }
  0x3d   :  { %6025 = vmatpush3.bf16.msra.mxu0 %v6733_v12  ;;  %v167_v19 = vand.u32 4294901760, %v166_v13  ;;  %v174_v20 = vand.u32 4294901760, %v173_v14  ;;  %v155_v21 = vsub.f32 %v83_v11, %v154_v15  ;;  %v6741_v32 = vpack.c.bf16 %v173_v14, %v166_v13  ;;  %p6552_p10 = scmp.ne.s32.totalorder %s5036_s14, %s6551_s15  ;;  %p6557_p12 = scmp.lt.s32.totalorder %s6551_s15, %s6551_s15 }
  0x3e   :  { %6026 = vmatprep.subr.bf16.mxu0 %v6630_v0  ;;  %v181_v22 = vand.u32 4294901760, %v180_v16  ;;  %v188_v23 = vand.u32 4294901760, %v187_v17  ;;  %v6750_v38 = vpack.c.bf16 %v187_v17, %v180_v16 }
  0x3f   :  { %v168_v24 = vsub.f32 %v166_v13, %v167_v19  ;;  %v175_v25 = vsub.f32 %v173_v14, %v174_v20  ;;  %v156_v26 = vand.u32 4294901760, %v155_v21  ;;  %v6758_v39 = vpack.c.bf16 %v174_v20, %v167_v19  ;;  %p6558_p13 = por %p6557_p12, %p6556_p11 }
  0x40   :  { %v182_v27 = vsub.f32 %v180_v16, %v181_v22  ;;  %v189_v28 = vsub.f32 %v187_v17, %v188_v23  ;;  %v6764_v40 = vpack.c.bf16 %v188_v23, %v181_v22 }
  0x41   :  { %6028 = vmatpush3.bf16.msra.mxu0 %v6736_v18  ;;  %v169_v29 = vand.u32 4294901760, %v168_v24  ;;  %v176_v30 = vand.u32 4294901760, %v175_v25  ;;  %v157_v31 = vsub.f32 %v155_v21, %v156_v26  ;;  %p6559_p0 = pnand %p6558_p13, %p6552_p10 }
  0x42   :  { %6035 = vmatprep.subr.bf16.mxu0 %v6630_v0  ;;  %v183_v33 = vand.u32 4294901760, %v182_v27  ;;  %v190_v34 = vand.u32 4294901760, %v189_v28 }
  0x43   :  { %v6743_v35 = vpack.c.bf16 %v176_v30, %v169_v29  ;;  %v158_v36 = vand.u32 4294901760, %v157_v31 }
  0x44   :  { %v6746_v37 = vpack.c.bf16 %v190_v34, %v183_v33 }
  0x45   :  { %6031 = vmatpush3.bf16.msra.mxu1 %v6743_v35  ;;  %5384 = vmatmul.mubr.f32.vlgmr.msra.gmra.mrb[0].mxu0 %v158_v36 }
  0x46   :  { %6037 = vmatpush3.bf16.msra.mxu0 %v6741_v32  ;;  %6032 = vmatprep.subr.bf16.mxu1 %v6630_v0 }
  0x47   :  { %6038 = vmatprep.subr.bf16.mxu0 %v6630_v0  ;;  %5405 = vmatprep.mubr.msk.f32.mxu0 %vm6631_vm0, %v6632_v1 }
  0x49   :  { %6034 = vmatpush3.bf16.msra.mxu1 %v6746_v37 }
  0x4a   :  { %6040 = vmatpush3.bf16.msra.mxu0 %v6750_v38  ;;  %6041 = vmatprep.subr.bf16.mxu1 %v6630_v0 }
  0x4b   :  { %6047 = vmatprep.subr.bf16.mxu0 %v6630_v0 }
  0x4c   :  { %5395 = vmatmul.mubr.f32.vlgmr.msra.gmra.mrb[0].mxu1 %v154_v15 }
  0x4d   :  { %6043 = vmatpush3.bf16.msra.mxu1 %v6733_v12  ;;  %5406 = vmatmul.mubr.f32.vlgmr.msra.gmra.mrb[2].mxu0 %v155_v21 }
  0x4e   :  { %6049 = vmatpush3.bf16.msra.mxu0 %v6758_v39  ;;  %6044 = vmatprep.subr.bf16.mxu1 %v6630_v0 }
  0x4f   :  { %6050 = vmatprep.subr.bf16.mxu0 %v6630_v0  ;;  %5416 = vmatprep.mubr.msk.f32.mxu1 %vm6631_vm0, %v6632_v1 }
  0x50   :  { %5427 = vmatprep.mubr.msk.f32.mxu0 %vm6631_vm0, %v6632_v1 }
  0x51   :  { %6046 = vmatpush3.bf16.msra.mxu1 %v6736_v18 }
  0x52   :  { %6052 = vmatpush3.bf16.msra.mxu0 %v6764_v40  ;;  %6053 = vmatprep.subr.bf16.mxu1 %v6630_v0 }
  0x53   :  { %6059 = vmatprep.subr.bf16.mxu0 %v6630_v0 }
  0x54   :  { %5417 = vmatmul.mubr.f32.vlgmr.msra.gmra.mrb[2].mxu1 %v156_v26 }
  0x55   :  { %6055 = vmatpush3.bf16.msra.mxu1 %v6733_v12  ;;  %5428 = vmatmul.mubr.f32.vlgmr.msra.gmra.mrb[4].mxu0 %v154_v15 }
  0x56   :  { %6056 = vmatprep.subr.bf16.mxu1 %v6630_v0  ;;  %5438 = vmatprep.mubr.msk.f32.mxu1 %vm6631_vm0, %v6632_v1 }
  0x57   :  { %6061 = vmatpush3.bf16.msra.mxu0 %v6733_v12  ;;  %5449 = vmatprep.mubr.msk.f32.mxu0 %vm6631_vm0, %v6632_v1 }
  0x58   :  { %6062 = vmatprep.subr.bf16.mxu0 %v6630_v0 }
  0x59   :  { %6058 = vmatpush3.bf16.msra.mxu1 %v6736_v18 }
  0x5a   :  { %6065 = vmatprep.subr.bf16.mxu1 %v6630_v0 }
  0x5b   :  { %6064 = vmatpush3.bf16.msra.mxu0 %v6736_v18 }
  0x5c   :  { %5439 = vmatmul.mubr.f32.vlgmr.msra.gmra.mrb[4].mxu1 %v154_v15  ;;  %6071 = vmatprep.subr.bf16.mxu0 %v6630_v0 }
  0x5d   :  { %6067 = vmatpush3.bf16.msra.mxu1 %v6743_v35  ;;  %5460 = vmatprep.mubr.msk.f32.mxu1 %vm6631_vm0, %v6632_v1 }
  0x5e   :  { %6068 = vmatprep.subr.bf16.mxu1 %v6630_v0 }
  0x61   :  { %6070 = vmatpush3.bf16.msra.mxu1 %v6746_v37 }
  0x62   :  { %6077 = vmatprep.subr.bf16.mxu1 %v6630_v0 }
 0x118   :  { %v160_v41 = vpop.f32.mrb[0].mxu0 }
 0x119   :  { %v5385_v42 = vpop.f32.mrb[1].mxu0 }
 0x11f   :  { %v251_v43 = vpop.f32.mrb[0].mxu1 }
 0x120   :  { %v252_v44 = vadd.f32 %v251_v43, %v160_v41  ;;  %v5396_v45 = vpop.f32.mrb[1].mxu1  ;;  %v331_v46 = vpop.f32.mrb[2].mxu0 }
 0x121   :  { %v5407_v47 = vpop.f32.mrb[3].mxu0  ;;  %v74_v45 = vld [vmem:[#allocation2 + $0x8] sm:$0xff] }
 0x122   :  { %v332_v48 = vadd.f32 %v331_v46, %v252_v44 }
 0x127   :  { %v408_v49 = vpop.f32.mrb[2].mxu1 }
 0x128   :  { %v409_v50 = vadd.f32 %v408_v49, %v332_v48  ;;  %v5418_v51 = vpop.f32.mrb[3].mxu1  ;;  %v491_v52 = vpop.f32.mrb[4].mxu0 }
 0x129   :  { %v5429_v53 = vpop.f32.mrb[5].mxu0 }
 0x12a   :  { %v492_v54 = vadd.f32 %v491_v52, %v409_v50 }
 0x12f   :  { %v566_v56 = vpop.f32.mrb[4].mxu1 }
 0x130   :  { %v567_v57 = vadd.f32 %v566_v56, %v492_v54  ;;  %v5440_v58 = vpop.f32.mrb[5].mxu1 }
 0x132   :  { %v570_v59 = vadd.f32 %v567_v57, %v73_v55 }
 0x134   :  { %6421 = vtanh.f32 %v570_v59  ;;  %v571_v62 = vsub.f32 0.0, %v570_v59 }
 0x136   :  { %v572_v63 = vmul.f32 1.442695, %v571_v62 }
 0x138   :  { %6423 = vpow2.f32 %v572_v63 }
 0x13e   :  { %v6422_v60 = vpop.eup %6421 }
 0x13f   :  { %584 = vrot.lane.b32.xlu0 %v6422_v60, %s6633_s2 }
 0x142   :  { %v6424_v2 = vpop.eup %6423 }
 0x143   :  { %579 = vrot.lane.b32.xlu0 %v72_v61, %s6634_s11  ;;  %v574_v3 = vadd.f32 1.0, %v6424_v2 }
 0x145   :  { %6425 = vrcp.f32 %v574_v3 }
 0x14f   :  { %v6426_v4 = vpop.eup %6425 }
 0x1b1   :  { %v585_v5 = vpop.permute.xlu0 %584 }
 0x1b2   :  { %v587_v6 = vmul.f32 %v6426_v4, %v585_v5 }
 0x1b4   :  { %589 = vrot.lane.b32.xlu1 %v587_v6, %s6634_s11 }
 0x1b5   :  { %v580_v7 = vpop.permute.xlu0 %579 }
 0x1b6   :  { %v582_v8 = vmul.f32 %v6426_v4, %v580_v7 }
 0x226   :  { %v590_v9 = vpop.permute.xlu1 %589 }
 0x227   :  { %v6796_v10 = vadd.f32 %v590_v9, %v582_v8 }
 0x229   :  { %6427 = vtanh.f32 %v6796_v10 }
 0x233   :  { %v6428_v11 = vpop.eup %6427 }
 0x234   :  { %595 = vrot.lane.b32.xlu1 %v6428_v11, %s6633_s2 }
 0x2a6   :  { %v596_v13 = vpop.permute.xlu1 %595 }
 0x2a7   :  { %v598_v14 = vmul.f32 %v6426_v4, %v596_v13 }
 0x2a9   :  { %600 = vrot.lane.b32.xlu0 %v598_v14, %s6634_s11 }
 0x31b   :  { %v601_v15 = vpop.permute.xlu0 %600 }
 0x31c   :  { %v602_v16 = vsel %vm81_vm1, %v601_v15, 0 }
 0x31d   :  { %v6802_v17 = vand.u32 4294901760, %v602_v16 }
 0x31f   :  { %v6805_v19 = vsub.f32 %v602_v16, %v6802_v17  ;;  %5461 = vmatmul.mubr.f32.vlgmr.msra.gmra.mrb[6].mxu1 %v6802_v17 }
 0x320   :  { %6079 = vmatpush3.bf16.msra.mxu1 %v6733_v12  ;;  %5482 = vmatprep.mubr.msk.f32.mxu1 %vm6631_vm0, %v6632_v1 }
 0x321   :  { %6080 = vmatprep.subr.bf16.mxu1 %v6630_v0  ;;  %v6813_v20 = vand.u32 4294901760, %v6805_v19 }
 0x323   :  { %v676_v21 = vsub.f32 %v6805_v19, %v6813_v20 }
 0x324   :  { %6082 = vmatpush3.bf16.msra.mxu1 %v6736_v18 }
 0x325   :  { %6089 = vmatprep.subr.bf16.mxu1 %v6630_v0  ;;  %v6819_v22 = vand.u32 4294901760, %v676_v21 }
 0x327   :  { %5483 = vmatmul.mubr.f32.vlgmr.msra.gmra.mrb[8].mxu1 %v6813_v20  ;;  %5450 = vmatmul.mubr.f32.vlgmr.msra.gmra.mrb[6].mxu0 %v6819_v22 }
 0x328   :  { %6073 = vmatpush3.bf16.msra.mxu0 %v6741_v32  ;;  %6091 = vmatpush3.bf16.msra.mxu1 %v6733_v12 }
 0x329   :  { %6074 = vmatprep.subr.bf16.mxu0 %v6630_v0  ;;  %6092 = vmatprep.subr.bf16.mxu1 %v6630_v0 }
 0x32a   :  { %5471 = vmatprep.mubr.msk.f32.mxu0 %vm6631_vm0, %v6632_v1  ;;  %5504 = vmatprep.mubr.msk.f32.mxu1 %vm6631_vm0, %v6632_v1 }
 0x32c   :  { %6076 = vmatpush3.bf16.msra.mxu0 %v6750_v38  ;;  %6094 = vmatpush3.bf16.msra.mxu1 %v6736_v18 }
 0x32d   :  { %6083 = vmatprep.subr.bf16.mxu0 %v6630_v0  ;;  %6101 = vmatprep.subr.bf16.mxu1 %v6630_v0 }
 0x32f   :  { %5472 = vmatmul.mubr.f32.vlgmr.msra.gmra.mrb[8].mxu0 %v6805_v19  ;;  %5505 = vmatmul.mubr.f32.vlgmr.msra.gmra.mrb[10].mxu1 %v6802_v17 }
 0x330   :  { %6085 = vmatpush3.bf16.msra.mxu0 %v6758_v39  ;;  %5493 = vmatprep.mubr.msk.f32.mxu0 %vm6631_vm0, %v6632_v1 }
 0x331   :  { %6086 = vmatprep.subr.bf16.mxu0 %v6630_v0  ;;  %6103 = vmatpush3.bf16.msra.mxu1 %v6743_v35 }
 0x332   :  { %6104 = vmatprep.subr.bf16.mxu1 %v6630_v0  ;;  %5526 = vmatprep.mubr.msk.f32.mxu1 %vm6631_vm0, %v6632_v1 }
 0x334   :  { %6088 = vmatpush3.bf16.msra.mxu0 %v6764_v40 }
 0x335   :  { %6106 = vmatpush3.bf16.msra.mxu1 %v6746_v37  ;;  %6095 = vmatprep.subr.bf16.mxu0 %v6630_v0 }
 0x336   :  { %6113 = vmatprep.subr.bf16.mxu1 %v6630_v0 }
 0x337   :  { %5494 = vmatmul.mubr.f32.vlgmr.msra.gmra.mrb[10].mxu0 %v6802_v17 }
 0x338   :  { %6097 = vmatpush3.bf16.msra.mxu0 %v6733_v12  ;;  %5515 = vmatprep.mubr.msk.f32.mxu0 %vm6631_vm0, %v6632_v1 }
 0x339   :  { %6098 = vmatprep.subr.bf16.mxu0 %v6630_v0 }
 0x33c   :  { %6100 = vmatpush3.bf16.msra.mxu0 %v6736_v18 }
 0x33d   :  { %6107 = vmatprep.subr.bf16.mxu0 %v6630_v0 }
 0x3f2   :  { %v770_v23 = vpop.f32.mrb[6].mxu1 }
 0x3f3   :  { %v5462_v24 = vpop.f32.mrb[7].mxu1 }
 0x3fa   :  { %v927_v25 = vpop.f32.mrb[8].mxu1  ;;  %v679_v26 = vpop.f32.mrb[6].mxu0 }
 0x3fb   :  { %v771_v27 = vadd.f32 %v770_v23, %v679_v26  ;;  %v5484_v28 = vpop.f32.mrb[9].mxu1  ;;  %v5451_v29 = vpop.f32.mrb[7].mxu0 }
 0x3fc   :  { %v75_v29 = vld [vmem:[#allocation2 + $0x10] sm:$0xff] }
 0x402   :  { %v850_v30 = vpop.f32.mrb[8].mxu0  ;;  %v1085_v31 = vpop.f32.mrb[10].mxu1 }
 0x403   :  { %v851_v33 = vadd.f32 %v850_v30, %v771_v27  ;;  %v5473_v34 = vpop.f32.mrb[9].mxu0  ;;  %v5506_v36 = vpop.f32.mrb[11].mxu1 }
 0x405   :  { %v928_v41 = vadd.f32 %v927_v25, %v851_v33 }
 0x40a   :  { %v1010_v42 = vpop.f32.mrb[10].mxu0 }
 0x40b   :  { %v1011_v43 = vadd.f32 %v1010_v42, %v928_v41  ;;  %v5495_v44 = vpop.f32.mrb[11].mxu0 }
 0x40d   :  { %v1086_v46 = vadd.f32 %v1085_v31, %v1011_v43 }
 0x40f   :  { %v1089_v47 = vadd.f32 %v1086_v46, %v74_v45 }
 0x411   :  { %6429 = vtanh.f32 %v1089_v47  ;;  %v1090_v49 = vsub.f32 0.0, %v1089_v47 }
 0x413   :  { %v1091_v50 = vmul.f32 1.442695, %v1090_v49 }
 0x415   :  { %6431 = vpow2.f32 %v1091_v50 }
 0x41b   :  { %v6430_v48 = vpop.eup %6429 }
 0x41c   :  { %1099 = vrot.lane.b32.xlu1 %v6430_v48, %s6633_s2 }
 0x41f   :  { %v6432_v51 = vpop.eup %6431 }
 0x420   :  { %v1093_v52 = vadd.f32 1.0, %v6432_v51 }
 0x422   :  { %6433 = vrcp.f32 %v1093_v52 }
 0x42c   :  { %v6434_v53 = vpop.eup %6433 }
 0x42d   :  { %v1097_v56 = vmul.f32 %v6434_v53, %v6796_v10 }
 0x48e   :  { %v1100_v54 = vpop.permute.xlu1 %1099 }
 0x48f   :  { %v1102_v55 = vmul.f32 %v6434_v53, %v1100_v54 }
 0x491   :  { %1104 = vrot.lane.b32.xlu0 %v1102_v55, %s6634_s11 }
 0x503   :  { %v1105_v57 = vpop.permute.xlu0 %1104 }
 0x504   :  { %v6859_v58 = vadd.f32 %v1105_v57, %v1097_v56 }
 0x506   :  { %6435 = vtanh.f32 %v6859_v58 }
 0x510   :  { %v6436_v59 = vpop.eup %6435 }
 0x511   :  { %1110 = vrot.lane.b32.xlu1 %v6436_v59, %s6633_s2 }
 0x583   :  { %v1111_v60 = vpop.permute.xlu1 %1110 }
 0x584   :  { %v1113_v61 = vmul.f32 %v6434_v53, %v1111_v60 }
 0x586   :  { %1115 = vrot.lane.b32.xlu0 %v1113_v61, %s6634_s11 }
 0x5f8   :  { %v1116_v62 = vpop.permute.xlu0 %1115 }
 0x5f9   :  { %v1117_v63 = vsel %vm81_vm1, %v1116_v62, 0 }
 0x5fa   :  { %v6865_v2 = vand.u32 4294901760, %v1117_v63 }
 0x5fc   :  { %v6868_v3 = vsub.f32 %v1117_v63, %v6865_v2  ;;  %5527 = vmatmul.mubr.f32.vlgmr.msra.gmra.mrb[12].mxu1 %v6865_v2 }
 0x5fd   :  { %6115 = vmatpush3.bf16.msra.mxu1 %v6733_v12  ;;  %5548 = vmatprep.mubr.msk.f32.mxu1 %vm6631_vm0, %v6632_v1 }
 0x5fe   :  { %6116 = vmatprep.subr.bf16.mxu1 %v6630_v0  ;;  %v6876_v4 = vand.u32 4294901760, %v6868_v3 }
 0x600   :  { %v1191_v5 = vsub.f32 %v6868_v3, %v6876_v4 }
 0x601   :  { %6118 = vmatpush3.bf16.msra.mxu1 %v6736_v18 }
 0x602   :  { %6125 = vmatprep.subr.bf16.mxu1 %v6630_v0  ;;  %v6882_v6 = vand.u32 4294901760, %v1191_v5 }
 0x604   :  { %5549 = vmatmul.mubr.f32.vlgmr.msra.gmra.mrb[14].mxu1 %v6876_v4  ;;  %5516 = vmatmul.mubr.f32.vlgmr.msra.gmra.mrb[12].mxu0 %v6882_v6 }
 0x605   :  { %6109 = vmatpush3.bf16.msra.mxu0 %v6741_v32  ;;  %6127 = vmatpush3.bf16.msra.mxu1 %v6733_v12 }
 0x606   :  { %6110 = vmatprep.subr.bf16.mxu0 %v6630_v0  ;;  %6128 = vmatprep.subr.bf16.mxu1 %v6630_v0 }
 0x607   :  { %5537 = vmatprep.mubr.msk.f32.mxu0 %vm6631_vm0, %v6632_v1  ;;  %5570 = vmatprep.mubr.msk.f32.mxu1 %vm6631_vm0, %v6632_v1 }
 0x609   :  { %6112 = vmatpush3.bf16.msra.mxu0 %v6750_v38  ;;  %6130 = vmatpush3.bf16.msra.mxu1 %v6736_v18 }
 0x60a   :  { %6119 = vmatprep.subr.bf16.mxu0 %v6630_v0  ;;  %6137 = vmatprep.subr.bf16.mxu1 %v6630_v0 }
 0x60c   :  { %5538 = vmatmul.mubr.f32.vlgmr.msra.gmra.mrb[14].mxu0 %v6868_v3  ;;  %5571 = vmatmul.mubr.f32.vlgmr.msra.gmra.mrb[16].mxu1 %v6865_v2 }
 0x60d   :  { %6121 = vmatpush3.bf16.msra.mxu0 %v6758_v39  ;;  %5559 = vmatprep.mubr.msk.f32.mxu0 %vm6631_vm0, %v6632_v1 }
 0x60e   :  { %6122 = vmatprep.subr.bf16.mxu0 %v6630_v0  ;;  %6139 = vmatpush3.bf16.msra.mxu1 %v6743_v35 }
 0x60f   :  { %6140 = vmatprep.subr.bf16.mxu1 %v6630_v0  ;;  %5592 = vmatprep.mubr.msk.f32.mxu1 %vm6631_vm0, %v6632_v1 }
 0x611   :  { %6124 = vmatpush3.bf16.msra.mxu0 %v6764_v40 }
 0x612   :  { %6142 = vmatpush3.bf16.msra.mxu1 %v6746_v37  ;;  %6131 = vmatprep.subr.bf16.mxu0 %v6630_v0 }
 0x613   :  { %6149 = vmatprep.subr.bf16.mxu1 %v6630_v0 }
 0x614   :  { %5560 = vmatmul.mubr.f32.vlgmr.msra.gmra.mrb[16].mxu0 %v6865_v2 }
 0x615   :  { %6133 = vmatpush3.bf16.msra.mxu0 %v6733_v12  ;;  %5581 = vmatprep.mubr.msk.f32.mxu0 %vm6631_vm0, %v6632_v1 }
 0x616   :  { %6134 = vmatprep.subr.bf16.mxu0 %v6630_v0 }
 0x619   :  { %6136 = vmatpush3.bf16.msra.mxu0 %v6736_v18 }
 0x61a   :  { %6143 = vmatprep.subr.bf16.mxu0 %v6630_v0 }
 0x6cf   :  { %v1285_v7 = vpop.f32.mrb[12].mxu1 }
 0x6d0   :  { %v5528_v8 = vpop.f32.mrb[13].mxu1 }
 0x6d7   :  { %v1442_v9 = vpop.f32.mrb[14].mxu1  ;;  %v1194_v10 = vpop.f32.mrb[12].mxu0 }
 0x6d8   :  { %v1286_v11 = vadd.f32 %v1285_v7, %v1194_v10  ;;  %v5550_v13 = vpop.f32.mrb[15].mxu1  ;;  %v5517_v14 = vpop.f32.mrb[13].mxu0 }
 0x6df   :  { %v1365_v15 = vpop.f32.mrb[14].mxu0  ;;  %v1600_v16 = vpop.f32.mrb[16].mxu1 }
 0x6e0   :  { %v1366_v21 = vadd.f32 %v1365_v15, %v1286_v11  ;;  %v5539_v23 = vpop.f32.mrb[15].mxu0  ;;  %v5572_v24 = vpop.f32.mrb[17].mxu1 }
 0x6e1   :  { %v76_v23 = vld [vmem:[#allocation2 + $0x18] sm:$0xff] }
 0x6e2   :  { %v1443_v25 = vadd.f32 %v1442_v9, %v1366_v21 }
 0x6e7   :  { %v1525_v26 = vpop.f32.mrb[16].mxu0 }
 0x6e8   :  { %v1526_v27 = vadd.f32 %v1525_v26, %v1443_v25  ;;  %v5561_v28 = vpop.f32.mrb[17].mxu0 }
 0x6ea   :  { %v1601_v30 = vadd.f32 %v1600_v16, %v1526_v27 }
 0x6ec   :  { %v1604_v31 = vadd.f32 %v1601_v30, %v75_v29 }
 0x6ee   :  { %6437 = vtanh.f32 %v1604_v31  ;;  %v1605_v34 = vsub.f32 0.0, %v1604_v31 }
 0x6f0   :  { %v1606_v36 = vmul.f32 1.442695, %v1605_v34 }
 0x6f2   :  { %6439 = vpow2.f32 %v1606_v36 }
 0x6f8   :  { %v6438_v33 = vpop.eup %6437 }
 0x6f9   :  { %1614 = vrot.lane.b32.xlu1 %v6438_v33, %s6633_s2 }
 0x6fc   :  { %v6440_v41 = vpop.eup %6439 }
 0x6fd   :  { %v1608_v42 = vadd.f32 1.0, %v6440_v41 }
 0x6ff   :  { %6441 = vrcp.f32 %v1608_v42 }
 0x709   :  { %v6442_v43 = vpop.eup %6441 }
 0x70a   :  { %v1612_v46 = vmul.f32 %v6442_v43, %v6859_v58 }
 0x76b   :  { %v1615_v44 = vpop.permute.xlu1 %1614 }
 0x76c   :  { %v1617_v45 = vmul.f32 %v6442_v43, %v1615_v44 }
 0x76e   :  { %1619 = vrot.lane.b32.xlu0 %v1617_v45, %s6634_s11 }
 0x7e0   :  { %v1620_v47 = vpop.permute.xlu0 %1619 }
 0x7e1   :  { %v6922_v48 = vadd.f32 %v1620_v47, %v1612_v46 }
 0x7e3   :  { %6443 = vtanh.f32 %v6922_v48 }
 0x7ed   :  { %v6444_v49 = vpop.eup %6443 }
 0x7ee   :  { %1625 = vrot.lane.b32.xlu1 %v6444_v49, %s6633_s2 }
 0x860   :  { %v1626_v50 = vpop.permute.xlu1 %1625 }
 0x861   :  { %v1628_v51 = vmul.f32 %v6442_v43, %v1626_v50 }
 0x863   :  { %1630 = vrot.lane.b32.xlu0 %v1628_v51, %s6634_s11 }
 0x8d5   :  { %v1631_v52 = vpop.permute.xlu0 %1630 }
 0x8d6   :  { %v1632_v53 = vsel %vm81_vm1, %v1631_v52, 0 }
 0x8d7   :  { %v6928_v54 = vand.u32 4294901760, %v1632_v53 }
 0x8d9   :  { %v6931_v55 = vsub.f32 %v1632_v53, %v6928_v54  ;;  %5593 = vmatmul.mubr.f32.vlgmr.msra.gmra.mrb[18].mxu1 %v6928_v54 }
 0x8da   :  { %6151 = vmatpush3.bf16.msra.mxu1 %v6733_v12  ;;  %5614 = vmatprep.mubr.msk.f32.mxu1 %vm6631_vm0, %v6632_v1 }
 0x8db   :  { %6152 = vmatprep.subr.bf16.mxu1 %v6630_v0  ;;  %v6939_v56 = vand.u32 4294901760, %v6931_v55 }
 0x8dd   :  { %v1706_v57 = vsub.f32 %v6931_v55, %v6939_v56 }
 0x8de   :  { %6154 = vmatpush3.bf16.msra.mxu1 %v6736_v18 }
 0x8df   :  { %6161 = vmatprep.subr.bf16.mxu1 %v6630_v0  ;;  %v6945_v58 = vand.u32 4294901760, %v1706_v57 }
 0x8e1   :  { %5615 = vmatmul.mubr.f32.vlgmr.msra.gmra.mrb[20].mxu1 %v6939_v56  ;;  %5582 = vmatmul.mubr.f32.vlgmr.msra.gmra.mrb[18].mxu0 %v6945_v58 }
 0x8e2   :  { %6145 = vmatpush3.bf16.msra.mxu0 %v6741_v32  ;;  %6163 = vmatpush3.bf16.msra.mxu1 %v6733_v12 }
 0x8e3   :  { %6146 = vmatprep.subr.bf16.mxu0 %v6630_v0  ;;  %6164 = vmatprep.subr.bf16.mxu1 %v6630_v0 }
 0x8e4   :  { %5603 = vmatprep.mubr.msk.f32.mxu0 %vm6631_vm0, %v6632_v1  ;;  %5636 = vmatprep.mubr.msk.f32.mxu1 %vm6631_vm0, %v6632_v1 }
 0x8e6   :  { %6148 = vmatpush3.bf16.msra.mxu0 %v6750_v38  ;;  %6166 = vmatpush3.bf16.msra.mxu1 %v6736_v18 }
 0x8e7   :  { %6155 = vmatprep.subr.bf16.mxu0 %v6630_v0  ;;  %6173 = vmatprep.subr.bf16.mxu1 %v6630_v0 }
 0x8e9   :  { %5604 = vmatmul.mubr.f32.vlgmr.msra.gmra.mrb[20].mxu0 %v6931_v55  ;;  %5637 = vmatmul.mubr.f32.vlgmr.msra.gmra.mrb[22].mxu1 %v6928_v54 }
 0x8ea   :  { %6157 = vmatpush3.bf16.msra.mxu0 %v6758_v39  ;;  %5625 = vmatprep.mubr.msk.f32.mxu0 %vm6631_vm0, %v6632_v1 }
 0x8eb   :  { %6158 = vmatprep.subr.bf16.mxu0 %v6630_v0  ;;  %6175 = vmatpush3.bf16.msra.mxu1 %v6743_v35 }
 0x8ec   :  { %6176 = vmatprep.subr.bf16.mxu1 %v6630_v0  ;;  %5658 = vmatprep.mubr.msk.f32.mxu1 %vm6631_vm0, %v6632_v1 }
 0x8ee   :  { %6160 = vmatpush3.bf16.msra.mxu0 %v6764_v40 }
 0x8ef   :  { %6178 = vmatpush3.bf16.msra.mxu1 %v6746_v37  ;;  %6167 = vmatprep.subr.bf16.mxu0 %v6630_v0 }
 0x8f0   :  { %6185 = vmatprep.subr.bf16.mxu1 %v6630_v0 }
 0x8f1   :  { %5626 = vmatmul.mubr.f32.vlgmr.msra.gmra.mrb[22].mxu0 %v6928_v54 }
 0x8f2   :  { %6169 = vmatpush3.bf16.msra.mxu0 %v6733_v12  ;;  %5647 = vmatprep.mubr.msk.f32.mxu0 %vm6631_vm0, %v6632_v1 }
 0x8f3   :  { %6170 = vmatprep.subr.bf16.mxu0 %v6630_v0 }
 0x8f6   :  { %6172 = vmatpush3.bf16.msra.mxu0 %v6736_v18 }
 0x8f7   :  { %6179 = vmatprep.subr.bf16.mxu0 %v6630_v0 }
 0x9ac   :  { %v1800_v59 = vpop.f32.mrb[18].mxu1 }
 0x9ad   :  { %v5594_v60 = vpop.f32.mrb[19].mxu1 }
 0x9b4   :  { %v1957_v61 = vpop.f32.mrb[20].mxu1  ;;  %v1709_v62 = vpop.f32.mrb[18].mxu0 }
 0x9b5   :  { %v1801_v63 = vadd.f32 %v1800_v59, %v1709_v62  ;;  %v5616_v5 = vpop.f32.mrb[21].mxu1  ;;  %v5583_v7 = vpop.f32.mrb[19].mxu0 }
 0x9bc   :  { %v1880_v8 = vpop.f32.mrb[20].mxu0  ;;  %v2115_v9 = vpop.f32.mrb[22].mxu1 }
 0x9bd   :  { %v1881_v10 = vadd.f32 %v1880_v8, %v1801_v63  ;;  %v5605_v11 = vpop.f32.mrb[21].mxu0  ;;  %v5638_v13 = vpop.f32.mrb[23].mxu1 }
 0x9bf   :  { %v1958_v14 = vadd.f32 %v1957_v61, %v1881_v10 }
 0x9c4   :  { %v2040_v15 = vpop.f32.mrb[22].mxu0 }
 0x9c5   :  { %v2041_v16 = vadd.f32 %v2040_v15, %v1958_v14  ;;  %v5627_v21 = vpop.f32.mrb[23].mxu0 }
 0x9c7   :  { %v2116_v24 = vadd.f32 %v2115_v9, %v2041_v16  ;;  %v77_v16 = vld [vmem:[#allocation2 + $0x20] sm:$0xff] }
 0x9c9   :  { %v2119_v25 = vadd.f32 %v2116_v24, %v76_v23 }
 0x9cb   :  { %6445 = vtanh.f32 %v2119_v25  ;;  %v2120_v27 = vsub.f32 0.0, %v2119_v25 }
 0x9cd   :  { %v2121_v28 = vmul.f32 1.442695, %v2120_v27 }
 0x9cf   :  { %6447 = vpow2.f32 %v2121_v28 }
 0x9d5   :  { %v6446_v26 = vpop.eup %6445 }
 0x9d6   :  { %2129 = vrot.lane.b32.xlu1 %v6446_v26, %s6633_s2 }
 0x9d9   :  { %v6448_v29 = vpop.eup %6447 }
 0x9da   :  { %v2123_v30 = vadd.f32 1.0, %v6448_v29 }
 0x9dc   :  { %6449 = vrcp.f32 %v2123_v30 }
 0x9e6   :  { %v6450_v31 = vpop.eup %6449 }
 0x9e7   :  { %v2127_v36 = vmul.f32 %v6450_v31, %v6922_v48 }
 0xa48   :  { %v2130_v33 = vpop.permute.xlu1 %2129 }
 0xa49   :  { %v2132_v34 = vmul.f32 %v6450_v31, %v2130_v33 }
 0xa4b   :  { %2134 = vrot.lane.b32.xlu0 %v2132_v34, %s6634_s11 }
 0xabd   :  { %v2135_v41 = vpop.permute.xlu0 %2134 }
 0xabe   :  { %v6985_v42 = vadd.f32 %v2135_v41, %v2127_v36 }
 0xac0   :  { %6451 = vtanh.f32 %v6985_v42 }
 0xaca   :  { %v6452_v43 = vpop.eup %6451 }
 0xacb   :  { %2140 = vrot.lane.b32.xlu1 %v6452_v43, %s6633_s2 }
 0xb3d   :  { %v2141_v44 = vpop.permute.xlu1 %2140 }
 0xb3e   :  { %v2143_v45 = vmul.f32 %v6450_v31, %v2141_v44 }
 0xb40   :  { %2145 = vrot.lane.b32.xlu0 %v2143_v45, %s6634_s11 }
 0xbb2   :  { %v2146_v46 = vpop.permute.xlu0 %2145 }
 0xbb3   :  { %v2147_v47 = vsel %vm81_vm1, %v2146_v46, 0 }
 0xbb4   :  { %v6991_v49 = vand.u32 4294901760, %v2147_v47 }
 0xbb6   :  { %v6994_v50 = vsub.f32 %v2147_v47, %v6991_v49  ;;  %5659 = vmatmul.mubr.f32.vlgmr.msra.gmra.mrb[24].mxu1 %v6991_v49 }
 0xbb7   :  { %6187 = vmatpush3.bf16.msra.mxu1 %v6733_v12  ;;  %5680 = vmatprep.mubr.msk.f32.mxu1 %vm6631_vm0, %v6632_v1 }
 0xbb8   :  { %6188 = vmatprep.subr.bf16.mxu1 %v6630_v0  ;;  %v7002_v48 = vand.u32 4294901760, %v6994_v50 }
 0xbba   :  { %v2221_v51 = vsub.f32 %v6994_v50, %v7002_v48 }
 0xbbb   :  { %6190 = vmatpush3.bf16.msra.mxu1 %v6736_v18 }
 0xbbc   :  { %6197 = vmatprep.subr.bf16.mxu1 %v6630_v0  ;;  %v7008_v52 = vand.u32 4294901760, %v2221_v51 }
 0xbbe   :  { %5681 = vmatmul.mubr.f32.vlgmr.msra.gmra.mrb[26].mxu1 %v7002_v48  ;;  %5648 = vmatmul.mubr.f32.vlgmr.msra.gmra.mrb[24].mxu0 %v7008_v52 }
 0xbbf   :  { %6181 = vmatpush3.bf16.msra.mxu0 %v6741_v32  ;;  %6199 = vmatpush3.bf16.msra.mxu1 %v6733_v12 }
 0xbc0   :  { %6182 = vmatprep.subr.bf16.mxu0 %v6630_v0  ;;  %6200 = vmatprep.subr.bf16.mxu1 %v6630_v0 }
 0xbc1   :  { %5669 = vmatprep.mubr.msk.f32.mxu0 %vm6631_vm0, %v6632_v1  ;;  %5702 = vmatprep.mubr.msk.f32.mxu1 %vm6631_vm0, %v6632_v1 }
 0xbc3   :  { %6184 = vmatpush3.bf16.msra.mxu0 %v6750_v38  ;;  %6202 = vmatpush3.bf16.msra.mxu1 %v6736_v18 }
 0xbc4   :  { %6191 = vmatprep.subr.bf16.mxu0 %v6630_v0  ;;  %6209 = vmatprep.subr.bf16.mxu1 %v6630_v0 }
 0xbc6   :  { %5670 = vmatmul.mubr.f32.vlgmr.msra.gmra.mrb[26].mxu0 %v6994_v50  ;;  %5703 = vmatmul.mubr.f32.vlgmr.msra.gmra.mrb[28].mxu1 %v6991_v49 }
 0xbc7   :  { %6193 = vmatpush3.bf16.msra.mxu0 %v6758_v39  ;;  %5691 = vmatprep.mubr.msk.f32.mxu0 %vm6631_vm0, %v6632_v1 }
 0xbc8   :  { %6194 = vmatprep.subr.bf16.mxu0 %v6630_v0  ;;  %6211 = vmatpush3.bf16.msra.mxu1 %v6743_v35 }
 0xbc9   :  { %6212 = vmatprep.subr.bf16.mxu1 %v6630_v0  ;;  %5724 = vmatprep.mubr.msk.f32.mxu1 %vm6631_vm0, %v6632_v1 }
 0xbcb   :  { %6196 = vmatpush3.bf16.msra.mxu0 %v6764_v40 }
 0xbcc   :  { %6214 = vmatpush3.bf16.msra.mxu1 %v6746_v37  ;;  %6203 = vmatprep.subr.bf16.mxu0 %v6630_v0 }
 0xbcd   :  { %6221 = vmatprep.subr.bf16.mxu1 %v6630_v0 }
 0xbce   :  { %5692 = vmatmul.mubr.f32.vlgmr.msra.gmra.mrb[28].mxu0 %v6991_v49 }
 0xbcf   :  { %6205 = vmatpush3.bf16.msra.mxu0 %v6733_v12  ;;  %5713 = vmatprep.mubr.msk.f32.mxu0 %vm6631_vm0, %v6632_v1 }
 0xbd0   :  { %6206 = vmatprep.subr.bf16.mxu0 %v6630_v0 }
 0xbd3   :  { %6208 = vmatpush3.bf16.msra.mxu0 %v6736_v18 }
 0xbd4   :  { %6215 = vmatprep.subr.bf16.mxu0 %v6630_v0 }
 0xc89   :  { %v2315_v53 = vpop.f32.mrb[24].mxu1 }
 0xc8a   :  { %v5660_v57 = vpop.f32.mrb[25].mxu1 }
 0xc91   :  { %v2472_v59 = vpop.f32.mrb[26].mxu1  ;;  %v2224_v60 = vpop.f32.mrb[24].mxu0 }
 0xc92   :  { %v2316_v61 = vadd.f32 %v2315_v53, %v2224_v60  ;;  %v5682_v62 = vpop.f32.mrb[27].mxu1  ;;  %v5649_v63 = vpop.f32.mrb[25].mxu0 }
 0xc99   :  { %v2395_v5 = vpop.f32.mrb[26].mxu0  ;;  %v2630_v7 = vpop.f32.mrb[28].mxu1 }
 0xc9a   :  { %v2396_v8 = vadd.f32 %v2395_v5, %v2316_v61  ;;  %v5671_v9 = vpop.f32.mrb[27].mxu0  ;;  %v5704_v10 = vpop.f32.mrb[29].mxu1 }
 0xc9c   :  { %v2473_v11 = vadd.f32 %v2472_v59, %v2396_v8 }
 0xca1   :  { %v2555_v13 = vpop.f32.mrb[28].mxu0 }
 0xca2   :  { %v2556_v14 = vadd.f32 %v2555_v13, %v2473_v11  ;;  %v5693_v15 = vpop.f32.mrb[29].mxu0 }
 0xca4   :  { %v2631_v21 = vadd.f32 %v2630_v7, %v2556_v14 }
 0xca6   :  { %v2634_v23 = vadd.f32 %v2631_v21, %v77_v16 }
 0xca8   :  { %6453 = vtanh.f32 %v2634_v23  ;;  %v2635_v25 = vsub.f32 0.0, %v2634_v23  ;;  %v78_v23 = vld [vmem:[#allocation2 + $0x28] sm:$0xff] }
 0xcaa   :  { %v2636_v26 = vmul.f32 1.442695, %v2635_v25 }
 0xcac   :  { %6455 = vpow2.f32 %v2636_v26 }
 0xcb2   :  { %v6454_v24 = vpop.eup %6453 }
 0xcb3   :  { %2644 = vrot.lane.b32.xlu1 %v6454_v24, %s6633_s2 }
 0xcb6   :  { %v6456_v27 = vpop.eup %6455 }
 0xcb7   :  { %v2638_v28 = vadd.f32 1.0, %v6456_v27 }
 0xcb9   :  { %6457 = vrcp.f32 %v2638_v28 }
 0xcc3   :  { %v6458_v29 = vpop.eup %6457 }
 0xcc4   :  { %v2642_v33 = vmul.f32 %v6458_v29, %v6985_v42 }
 0xd25   :  { %v2645_v30 = vpop.permute.xlu1 %2644 }
 0xd26   :  { %v2647_v31 = vmul.f32 %v6458_v29, %v2645_v30 }
 0xd28   :  { %2649 = vrot.lane.b32.xlu0 %v2647_v31, %s6634_s11 }
 0xd9a   :  { %v2650_v34 = vpop.permute.xlu0 %2649 }
 0xd9b   :  { %v7048_v36 = vadd.f32 %v2650_v34, %v2642_v33 }
 0xd9d   :  { %6459 = vtanh.f32 %v7048_v36 }
 0xda7   :  { %v6460_v41 = vpop.eup %6459 }
 0xda8   :  { %2655 = vrot.lane.b32.xlu1 %v6460_v41, %s6633_s2 }
 0xe1a   :  { %v2656_v43 = vpop.permute.xlu1 %2655 }
 0xe1b   :  { %v2658_v44 = vmul.f32 %v6458_v29, %v2656_v43 }
 0xe1d   :  { %2660 = vrot.lane.b32.xlu0 %v2658_v44, %s6634_s11 }
 0xe8f   :  { %v2661_v45 = vpop.permute.xlu0 %2660 }
 0xe90   :  { %v2662_v46 = vsel %vm81_vm1, %v2661_v45, 0 }
 0xe91   :  { %v7054_v47 = vand.u32 4294901760, %v2662_v46 }
 0xe93   :  { %v7057_v51 = vsub.f32 %v2662_v46, %v7054_v47  ;;  %5725 = vmatmul.mubr.f32.vlgmr.msra.gmra.mrb[30].mxu1 %v7054_v47 }
 0xe94   :  { %6223 = vmatpush3.bf16.msra.mxu1 %v6733_v12  ;;  %5746 = vmatprep.mubr.msk.f32.mxu1 %vm6631_vm0, %v6632_v1 }
 0xe95   :  { %6224 = vmatprep.subr.bf16.mxu1 %v6630_v0  ;;  %v7065_v42 = vand.u32 4294901760, %v7057_v51 }
 0xe97   :  { %v2736_v53 = vsub.f32 %v7057_v51, %v7065_v42 }
 0xe98   :  { %6226 = vmatpush3.bf16.msra.mxu1 %v6736_v18 }
 0xe99   :  { %6233 = vmatprep.subr.bf16.mxu1 %v6630_v0  ;;  %v7071_v57 = vand.u32 4294901760, %v2736_v53 }
 0xe9b   :  { %5747 = vmatmul.mubr.f32.vlgmr.msra.gmra.mrb[32].mxu1 %v7065_v42  ;;  %5714 = vmatmul.mubr.f32.vlgmr.msra.gmra.mrb[30].mxu0 %v7071_v57 }
 0xe9c   :  { %6217 = vmatpush3.bf16.msra.mxu0 %v6741_v32  ;;  %6235 = vmatpush3.bf16.msra.mxu1 %v6733_v12 }
 0xe9d   :  { %6218 = vmatprep.subr.bf16.mxu0 %v6630_v0  ;;  %6236 = vmatprep.subr.bf16.mxu1 %v6630_v0 }
 0xe9e   :  { %5735 = vmatprep.mubr.msk.f32.mxu0 %vm6631_vm0, %v6632_v1  ;;  %5768 = vmatprep.mubr.msk.f32.mxu1 %vm6631_vm0, %v6632_v1 }
 0xea0   :  { %6220 = vmatpush3.bf16.msra.mxu0 %v6750_v38  ;;  %6238 = vmatpush3.bf16.msra.mxu1 %v6736_v18 }
 0xea1   :  { %6227 = vmatprep.subr.bf16.mxu0 %v6630_v0  ;;  %6245 = vmatprep.subr.bf16.mxu1 %v6630_v0 }
 0xea3   :  { %5736 = vmatmul.mubr.f32.vlgmr.msra.gmra.mrb[32].mxu0 %v7057_v51  ;;  %5769 = vmatmul.mubr.f32.vlgmr.msra.gmra.mrb[34].mxu1 %v7054_v47 }
 0xea4   :  { %6229 = vmatpush3.bf16.msra.mxu0 %v6758_v39  ;;  %5757 = vmatprep.mubr.msk.f32.mxu0 %vm6631_vm0, %v6632_v1 }
 0xea5   :  { %6230 = vmatprep.subr.bf16.mxu0 %v6630_v0  ;;  %6247 = vmatpush3.bf16.msra.mxu1 %v6743_v35 }
 0xea6   :  { %6248 = vmatprep.subr.bf16.mxu1 %v6630_v0  ;;  %5790 = vmatprep.mubr.msk.f32.mxu1 %vm6631_vm0, %v6632_v1 }
 0xea8   :  { %6232 = vmatpush3.bf16.msra.mxu0 %v6764_v40 }
 0xea9   :  { %6250 = vmatpush3.bf16.msra.mxu1 %v6746_v37  ;;  %6239 = vmatprep.subr.bf16.mxu0 %v6630_v0 }
 0xeaa   :  { %6257 = vmatprep.subr.bf16.mxu1 %v6630_v0 }
 0xeab   :  { %5758 = vmatmul.mubr.f32.vlgmr.msra.gmra.mrb[34].mxu0 %v7054_v47 }
 0xeac   :  { %6241 = vmatpush3.bf16.msra.mxu0 %v6733_v12  ;;  %5779 = vmatprep.mubr.msk.f32.mxu0 %vm6631_vm0, %v6632_v1 }
 0xead   :  { %6242 = vmatprep.subr.bf16.mxu0 %v6630_v0 }
 0xeb0   :  { %6244 = vmatpush3.bf16.msra.mxu0 %v6736_v18 }
 0xeb1   :  { %6251 = vmatprep.subr.bf16.mxu0 %v6630_v0 }
 0xf66   :  { %v2830_v59 = vpop.f32.mrb[30].mxu1 }
 0xf67   :  { %v5726_v60 = vpop.f32.mrb[31].mxu1 }
 0xf6e   :  { %v2987_v61 = vpop.f32.mrb[32].mxu1  ;;  %v2739_v62 = vpop.f32.mrb[30].mxu0 }
 0xf6f   :  { %v2831_v63 = vadd.f32 %v2830_v59, %v2739_v62  ;;  %v5748_v5 = vpop.f32.mrb[33].mxu1  ;;  %v5715_v7 = vpop.f32.mrb[31].mxu0 }
 0xf76   :  { %v2910_v8 = vpop.f32.mrb[32].mxu0  ;;  %v3145_v9 = vpop.f32.mrb[34].mxu1 }
 0xf77   :  { %v2911_v10 = vadd.f32 %v2910_v8, %v2831_v63  ;;  %v5737_v11 = vpop.f32.mrb[33].mxu0  ;;  %v5770_v13 = vpop.f32.mrb[35].mxu1 }
 0xf79   :  { %v2988_v14 = vadd.f32 %v2987_v61, %v2911_v10 }
 0xf7e   :  { %v3070_v15 = vpop.f32.mrb[34].mxu0 }
 0xf7f   :  { %v3071_v16 = vadd.f32 %v3070_v15, %v2988_v14  ;;  %v5759_v21 = vpop.f32.mrb[35].mxu0 }
 0xf81   :  { %v3146_v24 = vadd.f32 %v3145_v9, %v3071_v16 }
 0xf83   :  { %v3149_v25 = vadd.f32 %v3146_v24, %v78_v23 }
 0xf85   :  { %6461 = vtanh.f32 %v3149_v25  ;;  %v3150_v27 = vsub.f32 0.0, %v3149_v25 }
 0xf87   :  { %v3151_v28 = vmul.f32 1.442695, %v3150_v27  ;;  %v79_v27 = vld [vmem:[#allocation2 + $0x30] sm:$0xff] }
 0xf89   :  { %6463 = vpow2.f32 %v3151_v28 }
 0xf8f   :  { %v6462_v26 = vpop.eup %6461 }
 0xf90   :  { %3159 = vrot.lane.b32.xlu1 %v6462_v26, %s6633_s2 }
 0xf93   :  { %v6464_v29 = vpop.eup %6463 }
 0xf94   :  { %v3153_v30 = vadd.f32 1.0, %v6464_v29 }
 0xf96   :  { %6465 = vrcp.f32 %v3153_v30 }
 0xfa0   :  { %v6466_v31 = vpop.eup %6465 }
 0xfa1   :  { %v3157_v41 = vmul.f32 %v6466_v31, %v7048_v36 }
0x1002   :  { %v3160_v33 = vpop.permute.xlu1 %3159 }
0x1003   :  { %v3162_v34 = vmul.f32 %v6466_v31, %v3160_v33 }
0x1005   :  { %3164 = vrot.lane.b32.xlu0 %v3162_v34, %s6634_s11 }
0x1077   :  { %v3165_v43 = vpop.permute.xlu0 %3164 }
0x1078   :  { %v7111_v44 = vadd.f32 %v3165_v43, %v3157_v41 }
0x107a   :  { %6467 = vtanh.f32 %v7111_v44 }
0x1084   :  { %v6468_v45 = vpop.eup %6467 }
0x1085   :  { %3170 = vrot.lane.b32.xlu1 %v6468_v45, %s6633_s2 }
0x10f7   :  { %v3171_v46 = vpop.permute.xlu1 %3170 }
0x10f8   :  { %v3173_v53 = vmul.f32 %v6466_v31, %v3171_v46 }
0x10fa   :  { %3175 = vrot.lane.b32.xlu0 %v3173_v53, %s6634_s11 }
0x116c   :  { %v3176_v59 = vpop.permute.xlu0 %3175 }
0x116d   :  { %v3177_v60 = vsel %vm81_vm1, %v3176_v59, 0 }
0x116e   :  { %v7117_v61 = vand.u32 4294901760, %v3177_v60 }
0x1170   :  { %v7120_v62 = vsub.f32 %v3177_v60, %v7117_v61  ;;  %5791 = vmatmul.mubr.f32.vlgmr.msra.gmra.mrb[36].mxu1 %v7117_v61 }
0x1171   :  { %6259 = vmatpush3.bf16.msra.mxu1 %v6733_v12  ;;  %5812 = vmatprep.mubr.msk.f32.mxu1 %vm6631_vm0, %v6632_v1 }
0x1172   :  { %6260 = vmatprep.subr.bf16.mxu1 %v6630_v0  ;;  %v7128_v36 = vand.u32 4294901760, %v7120_v62 }
0x1174   :  { %v3251_v63 = vsub.f32 %v7120_v62, %v7128_v36 }
0x1175   :  { %6262 = vmatpush3.bf16.msra.mxu1 %v6736_v18 }
0x1176   :  { %6269 = vmatprep.subr.bf16.mxu1 %v6630_v0  ;;  %v7134_v5 = vand.u32 4294901760, %v3251_v63 }
0x1178   :  { %5813 = vmatmul.mubr.f32.vlgmr.msra.gmra.mrb[38].mxu1 %v7128_v36  ;;  %5780 = vmatmul.mubr.f32.vlgmr.msra.gmra.mrb[36].mxu0 %v7134_v5 }
0x1179   :  { %6253 = vmatpush3.bf16.msra.mxu0 %v6741_v32  ;;  %6271 = vmatpush3.bf16.msra.mxu1 %v6733_v12 }
0x117a   :  { %6254 = vmatprep.subr.bf16.mxu0 %v6630_v0  ;;  %6272 = vmatprep.subr.bf16.mxu1 %v6630_v0 }
0x117b   :  { %5801 = vmatprep.mubr.msk.f32.mxu0 %vm6631_vm0, %v6632_v1  ;;  %5834 = vmatprep.mubr.msk.f32.mxu1 %vm6631_vm0, %v6632_v1 }
0x117d   :  { %6256 = vmatpush3.bf16.msra.mxu0 %v6750_v38  ;;  %6274 = vmatpush3.bf16.msra.mxu1 %v6736_v18 }
0x117e   :  { %6263 = vmatprep.subr.bf16.mxu0 %v6630_v0  ;;  %6281 = vmatprep.subr.bf16.mxu1 %v6630_v0 }
0x1180   :  { %5802 = vmatmul.mubr.f32.vlgmr.msra.gmra.mrb[38].mxu0 %v7120_v62  ;;  %5835 = vmatmul.mubr.f32.vlgmr.msra.gmra.mrb[40].mxu1 %v7117_v61 }
0x1181   :  { %6265 = vmatpush3.bf16.msra.mxu0 %v6758_v39  ;;  %5823 = vmatprep.mubr.msk.f32.mxu0 %vm6631_vm0, %v6632_v1 }
0x1182   :  { %6266 = vmatprep.subr.bf16.mxu0 %v6630_v0  ;;  %6283 = vmatpush3.bf16.msra.mxu1 %v6743_v35 }
0x1183   :  { %6284 = vmatprep.subr.bf16.mxu1 %v6630_v0  ;;  %5856 = vmatprep.mubr.msk.f32.mxu1 %vm6631_vm0, %v6632_v1 }
0x1185   :  { %6268 = vmatpush3.bf16.msra.mxu0 %v6764_v40 }
0x1186   :  { %6286 = vmatpush3.bf16.msra.mxu1 %v6746_v37  ;;  %6275 = vmatprep.subr.bf16.mxu0 %v6630_v0 }
0x1187   :  { %6293 = vmatprep.subr.bf16.mxu1 %v6630_v0 }
0x1188   :  { %5824 = vmatmul.mubr.f32.vlgmr.msra.gmra.mrb[40].mxu0 %v7117_v61 }
0x1189   :  { %6277 = vmatpush3.bf16.msra.mxu0 %v6733_v12  ;;  %5845 = vmatprep.mubr.msk.f32.mxu0 %vm6631_vm0, %v6632_v1 }
0x118a   :  { %6278 = vmatprep.subr.bf16.mxu0 %v6630_v0 }
0x118d   :  { %6280 = vmatpush3.bf16.msra.mxu0 %v6736_v18 }
0x118e   :  { %6287 = vmatprep.subr.bf16.mxu0 %v6630_v0 }
0x1243   :  { %v3345_v35 = vpop.f32.mrb[36].mxu1 }
0x1244   :  { %v5792_v7 = vpop.f32.mrb[37].mxu1 }
0x124b   :  { %v3502_v37 = vpop.f32.mrb[38].mxu1  ;;  %v3254_v8 = vpop.f32.mrb[36].mxu0 }
0x124c   :  { %v3346_v9 = vadd.f32 %v3345_v35, %v3254_v8  ;;  %v5814_v10 = vpop.f32.mrb[39].mxu1  ;;  %v5781_v11 = vpop.f32.mrb[37].mxu0 }
0x124d   :  { %v7191_v11 = vld [vmem:[#allocation7 + $0x20] sm:$0xff] }
0x1253   :  { %v3425_v13 = vpop.f32.mrb[38].mxu0  ;;  %v3660_v14 = vpop.f32.mrb[40].mxu1 }
0x1254   :  { %v3426_v15 = vadd.f32 %v3425_v13, %v3346_v9  ;;  %v5803_v16 = vpop.f32.mrb[39].mxu0  ;;  %v5836_v21 = vpop.f32.mrb[41].mxu1  ;;  %v7193_v13 = vld [vmem:[#allocation7 + $0x28] sm:$0xff] }
0x1255   :  { %v4224_v16 = vand.u32 4294901760, %v7191_v11  ;;  %v4227_v21 = vand.u32 4294901760, %v7193_v13 }
0x1256   :  { %v3503_v23 = vadd.f32 %v3502_v37, %v3426_v15 }
0x125b   :  { %v3585_v24 = vpop.f32.mrb[40].mxu0 }
0x125c   :  { %v3586_v25 = vadd.f32 %v3585_v24, %v3503_v23  ;;  %v5825_v26 = vpop.f32.mrb[41].mxu0  ;;  %v7200_v23 = vld [vmem:[#allocation7 + $0x30] sm:$0xff]  ;;  %v7202_v24 = vld [vmem:[#allocation7 + $0x38] sm:$0xff] }
0x125e   :  { %v3661_v28 = vadd.f32 %v3660_v14, %v3586_v25  ;;  %v7212_v25 = vpack.c.bf16 %v4227_v21, %v4224_v16 }
0x1260   :  { %v3664_v29 = vadd.f32 %v3661_v28, %v79_v27 }
0x1262   :  { %6469 = vtanh.f32 %v3664_v29  ;;  %v3665_v31 = vsub.f32 0.0, %v3664_v29 }
0x1264   :  { %v3666_v33 = vmul.f32 1.442695, %v3665_v31 }
0x1266   :  { %6471 = vpow2.f32 %v3666_v33 }
0x126c   :  { %v6470_v30 = vpop.eup %6469 }
0x126d   :  { %3674 = vrot.lane.b32.xlu1 %v6470_v30, %s6633_s2 }
0x1270   :  { %v6472_v34 = vpop.eup %6471 }
0x1271   :  { %v3668_v41 = vadd.f32 1.0, %v6472_v34 }
0x1273   :  { %6473 = vrcp.f32 %v3668_v41 }
0x127d   :  { %v6474_v43 = vpop.eup %6473 }
0x127e   :  { %v3672_v53 = vmul.f32 %v6474_v43, %v7111_v44 }
0x12df   :  { %v3675_v45 = vpop.permute.xlu1 %3674 }
0x12e0   :  { %v3677_v46 = vmul.f32 %v6474_v43, %v3675_v45 }
0x12e2   :  { %3679 = vrot.lane.b32.xlu0 %v3677_v46, %s6634_s11 }
0x1354   :  { %v3680_v59 = vpop.permute.xlu0 %3679 }
0x1355   :  { %v7174_v60 = vadd.f32 %v3680_v59, %v3672_v53  ;;  %v4374_v59 = vsub.f32 %v7191_v11, %v4224_v16 }
0x1357   :  { %6475 = vtanh.f32 %v7174_v60 }
0x1361   :  { %v6476_v63 = vpop.eup %6475 }
0x1362   :  { %3685 = vrot.lane.b32.xlu1 %v6476_v63, %s6633_s2  ;;  %v4381_v63 = vsub.f32 %v7193_v13, %v4227_v21 }
0x13d4   :  { %v3686_v35 = vpop.permute.xlu1 %3685 }
0x13d5   :  { %v3688_v7 = vmul.f32 %v6474_v43, %v3686_v35  ;;  %v4375_v35 = vand.u32 4294901760, %v4374_v59 }
0x13d7   :  { %3690 = vrot.lane.b32.xlu0 %v3688_v7, %s6634_s11  ;;  %v4382_v7 = vand.u32 4294901760, %v4381_v63 }
0x1449   :  { %v3691_v37 = vpop.permute.xlu0 %3690 }
0x144a   :  { %v3692_v8 = vsel %vm81_vm1, %v3691_v37, 0  ;;  %v4376_v37 = vsub.f32 %v4374_v59, %v4375_v35 }
0x144b   :  { %v7180_v9 = vand.u32 4294901760, %v3692_v8 }
0x144d   :  { %v7183_v10 = vsub.f32 %v3692_v8, %v7180_v9  ;;  %5857 = vmatmul.mubr.f32.vlgmr.msra.gmra.mrb[42].mxu1 %v7180_v9  ;;  %v4383_v8 = vsub.f32 %v4381_v63, %v4382_v7 }
0x144e   :  { %6295 = vmatpush3.bf16.msra.mxu1 %v6733_v12  ;;  %5878 = vmatprep.mubr.msk.f32.mxu1 %vm6631_vm0, %v6632_v1 }
0x144f   :  { %6296 = vmatprep.subr.bf16.mxu1 %v6630_v0  ;;  %v3765_v44 = vand.u32 4294901760, %v7183_v10 }
0x1451   :  { %v3766_v14 = vsub.f32 %v7183_v10, %v3765_v44 }
0x1452   :  { %6298 = vmatpush3.bf16.msra.mxu1 %v6736_v18 }
0x1453   :  { %6305 = vmatprep.subr.bf16.mxu1 %v6630_v0  ;;  %v3767_v15 = vand.u32 4294901760, %v3766_v14  ;;  %v4384_v14 = vand.u32 4294901760, %v4383_v8 }
0x1455   :  { %5879 = vmatmul.mubr.f32.vlgmr.msra.gmra.mrb[44].mxu1 %v3765_v44  ;;  %5846 = vmatmul.mubr.f32.vlgmr.msra.gmra.mrb[42].mxu0 %v3767_v15 }
0x1456   :  { %6289 = vmatpush3.bf16.msra.mxu0 %v6741_v32  ;;  %6307 = vmatpush3.bf16.msra.mxu1 %v6733_v12  ;;  %v4230_v32 = vand.u32 4294901760, %v7200_v23  ;;  %v4233_v12 = vand.u32 4294901760, %v7202_v24 }
0x1457   :  { %6290 = vmatprep.subr.bf16.mxu0 %v6630_v0  ;;  %6308 = vmatprep.subr.bf16.mxu1 %v6630_v0 }
0x1458   :  { %5867 = vmatprep.mubr.msk.f32.mxu0 %vm6631_vm0, %v6632_v1  ;;  %5900 = vmatprep.mubr.msk.f32.mxu1 %vm6631_vm0, %v6632_v1  ;;  %v7228_v26 = vpack.c.bf16 %v4233_v12, %v4230_v32  ;;  %v4388_v11 = vsub.f32 %v7200_v23, %v4230_v32  ;;  %v4395_v13 = vsub.f32 %v7202_v24, %v4233_v12 }
0x1459   :  { %v6327_v32 = vpack.c.bf16 %v4381_v63, %v4374_v59 }
0x145a   :  { %6292 = vmatpush3.bf16.msra.mxu0 %v6750_v38  ;;  %6310 = vmatpush3.bf16.msra.mxu1 %v6736_v18  ;;  %v4389_v16 = vand.u32 4294901760, %v4388_v11  ;;  %v4396_v21 = vand.u32 4294901760, %v4395_v13  ;;  %v6331_v12 = vpack.c.bf16 %v4395_v13, %v4388_v11 }
0x145b   :  { %6299 = vmatprep.subr.bf16.mxu0 %v6630_v0  ;;  %6312 = vmatprep.subr.bf16.mxu1 %v7212_v25 }
0x145d   :  { %5868 = vmatmul.mubr.f32.vlgmr.msra.gmra.mrb[44].mxu0 %v7183_v10  ;;  %5901 = vmatmul.mubr.f32.vlgmr.msra.gmra.mrb[46].mxu1 %v7180_v9 }
0x145e   :  { %6301 = vmatpush3.bf16.msra.mxu0 %v6758_v39  ;;  %6314 = vmatpush3.bf16.msra.mxu1 %v7212_v25 }
0x145f   :  { %5911 = vmatprep.mubr.f32.mxu1 %v6819_v22  ;;  %6302 = vmatprep.subr.bf16.mxu0 %v6630_v0 }
0x1460   :  { %6316 = vmatprep.subr.bf16.mxu1 %v7228_v26  ;;  %5889 = vmatprep.mubr.msk.f32.mxu0 %vm6631_vm0, %v6632_v1 }
0x1462   :  { %6304 = vmatpush3.bf16.msra.mxu0 %v6764_v40  ;;  %6318 = vmatpush3.bf16.msra.mxu1 %v7228_v26 }
0x1463   :  { %6336 = vmatprep.subr.bf16.mxu0 %v7212_v25 }
0x1465   :  { %5890 = vmatmul.mubr.f32.vlgmr.msra.gmra.mrb[46].mxu0 %v7180_v9  ;;  %5912 = vmatmul.mubr.f32.vlgmr.msra.gmra.mrb[48].mxu1 %v6882_v6 }
0x1466   :  { %5914 = vmatprep.mubr.f32.mxu1 %v6945_v58  ;;  %6338 = vmatpush3.bf16.msra.mxu0 %v7212_v25 }
0x1467   :  { %5971 = vmatprep.mubr.f32.mxu0 %v6813_v20  ;;  %6340 = vmatprep.subr.bf16.mxu0 %v7228_v26 }
0x1469   :  { %5915 = vmatmul.mubr.f32.gmra.mrb[50].mxu1 %v7008_v52 }
0x146a   :  { %5917 = vmatprep.mubr.f32.mxu1 %v7071_v57  ;;  %6342 = vmatpush3.bf16.msra.mxu0 %v7228_v26 }
0x146d   :  { %5918 = vmatmul.mubr.f32.gmra.mrb[52].mxu1 %v7134_v5  ;;  %5972 = vmatmul.mubr.f32.vlgmr.msra.gmra.mrb[48].mxu0 %v6876_v4 }
0x146e   :  { %5920 = vmatprep.mubr.f32.mxu1 %v3767_v15  ;;  %5974 = vmatprep.mubr.f32.mxu0 %v6939_v56 }
0x1471   :  { %5975 = vmatmul.mubr.f32.gmra.mrb[50].mxu0 %v7002_v48 }
0x1472   :  { %5977 = vmatprep.mubr.f32.mxu0 %v7065_v42  ;;  %v80_v42 = vld [vmem:[#allocation2 + $0x38] sm:$0xff] }
0x1475   :  { %5978 = vmatmul.mubr.f32.gmra.mrb[52].mxu0 %v7128_v36 }
0x1476   :  { %5980 = vmatprep.mubr.f32.mxu0 %v3765_v44  ;;  %v4377_v44 = vand.u32 4294901760, %v4376_v37 }
0x1520   :  { %v3860_v0 = vpop.f32.mrb[42].mxu1 }
0x1521   :  { %v5858_v1 = vpop.f32.mrb[43].mxu1 }
0x1522   :  { %v4390_v1 = vsub.f32 %v4388_v11, %v4389_v16 }
0x1528   :  { %v4017_v18 = vpop.f32.mrb[44].mxu1  ;;  %v3769_v38 = vpop.f32.mrb[42].mxu0 }
0x1529   :  { %v3861_v39 = vadd.f32 %v3860_v0, %v3769_v38  ;;  %v5880_v40 = vpop.f32.mrb[45].mxu1  ;;  %v5847_v20 = vpop.f32.mrb[43].mxu0  ;;  %v6319_v0 = vpack.c.bf16 %v4384_v14, %v4377_v44  ;;  %v6347_v38 = vpack.c.bf16 %v4396_v21, %v4389_v16 }
0x152b   :  { %6320 = vmatprep.subr.bf16.mxu1 %v6319_v0 }
0x152c   :  { %6322 = vmatpush3.bf16.msra.mxu1 %v6319_v0 }
0x1530   :  { %v3940_v22 = vpop.f32.mrb[44].mxu0  ;;  %v4175_v6 = vpop.f32.mrb[46].mxu1 }
0x1531   :  { %v3941_v4 = vadd.f32 %v3940_v22, %v3861_v39  ;;  %v5869_v58 = vpop.f32.mrb[45].mxu0  ;;  %v5902_v52 = vpop.f32.mrb[47].mxu1  ;;  %v4391_v39 = vand.u32 4294901760, %v4390_v1 }
0x1533   :  { %v4018_v56 = vadd.f32 %v4017_v18, %v3941_v4  ;;  %v4397_v18 = vsub.f32 %v4395_v13, %v4396_v21 }
0x1535   :  { %v4398_v40 = vand.u32 4294901760, %v4397_v18 }
0x1537   :  { %v6323_v22 = vpack.c.bf16 %v4398_v40, %v4391_v39 }
0x1538   :  { %v4100_v57 = vpop.f32.mrb[46].mxu0 }
0x1539   :  { %v4101_v48 = vadd.f32 %v4100_v57, %v4018_v56  ;;  %v5891_v5 = vpop.f32.mrb[47].mxu0  ;;  %6324 = vmatprep.subr.bf16.mxu1 %v6323_v22 }
0x153a   :  { %6326 = vmatpush3.bf16.msra.mxu1 %v6323_v22 }
0x153b   :  { %v4176_v27 = vadd.f32 %v4175_v6, %v4101_v48  ;;  %6328 = vmatprep.subr.bf16.mxu1 %v6327_v32 }
0x153d   :  { %v4179_v36 = vadd.f32 %v4176_v27, %v80_v42 }
0x153f   :  { %6477 = vtanh.f32 %v4179_v36  ;;  %v4180_v29 = vsub.f32 0.0, %v4179_v36 }
0x1541   :  { %v4181_v30 = vmul.f32 1.442695, %v4180_v29 }
0x1543   :  { %6479 = vpow2.f32 %v4181_v30 }
0x1549   :  { %v6478_v28 = vpop.eup %6477 }
0x154a   :  { %4189 = vrot.lane.b32.xlu1 %v6478_v28, %s6633_s2 }
0x154d   :  { %v6480_v31 = vpop.eup %6479 }
0x154e   :  { %v4183_v33 = vadd.f32 1.0, %v6480_v31 }
0x1550   :  { %6481 = vrcp.f32 %v4183_v33 }
0x155a   :  { %v6482_v34 = vpop.eup %6481 }
0x155b   :  { %v4187_v45 = vmul.f32 %v6482_v34, %v7174_v60  ;;  %v6343_v60 = vpack.c.bf16 %v4382_v7, %v4375_v35 }
0x155d   :  { %6344 = vmatprep.subr.bf16.mxu0 %v6343_v60 }
0x155e   :  { %6346 = vmatpush3.bf16.msra.mxu0 %v6343_v60 }
0x155f   :  { %6348 = vmatprep.subr.bf16.mxu0 %v6347_v38 }
0x1562   :  { %6350 = vmatpush3.bf16.msra.mxu0 %v6347_v38 }
0x1563   :  { %6352 = vmatprep.subr.bf16.mxu0 %v7212_v25 }
0x15bc   :  { %v4190_v41 = vpop.permute.xlu1 %4189 }
0x15bd   :  { %v4192_v43 = vmul.f32 %v6482_v34, %v4190_v41 }
0x15bf   :  { %4194 = vrot.lane.b32.xlu0 %v4192_v43, %s6634_s11 }
0x1631   :  { %v4195_v46 = vpop.permute.xlu0 %4194 }
0x1632   :  { %v4197_v53 = vadd.f32 %v4195_v46, %v4187_v45 }
0x1634   :  { %6483 = vtanh.f32 %v4197_v53 }
0x163e   :  { %v6484_v15 = vpop.eup %6483 }
0x163f   :  { %4200 = vrot.lane.b32.xlu1 %v6484_v15, %s6633_s2 }
0x1643   :  { %4210 = vrot.lane.b32.xlu1 %v4197_v53, %s6635_s12 }
0x16b1   :  { %v4201_v20 = vpop.permute.xlu1 %4200 }
0x16b2   :  { %v4203_v23 = vmul.f32 %v6482_v34, %v4201_v20 }
0x16b4   :  { %4205 = vrot.lane.b32.xlu0 %v4203_v23, %s6634_s11 }
0x16b5   :  { %v4211_v24 = vpop.permute.xlu1 %4210 }
0x16b6   :  { %4213 = vst.msk [vmem:[#allocation11] sm:$0xff] %vm81_vm1, %v4211_v24 }
0x1726   :  { %v4206_v6 = vpop.permute.xlu0 %4205 }
0x1727   :  { %v4221_v4 = vsel %vm81_vm1, %v4206_v6, 0  ;;  %4208 = vst.msk [vmem:[#allocation9] sm:$0xff] %vm81_vm1, %v4206_v6 }
0x1728   :  { %v4362_v58 = vand.u32 4294901760, %v4221_v4 }
0x172a   :  { %v4363_v52 = vsub.f32 %v4221_v4, %v4362_v58 }
0x172c   :  { %v4364_v56 = vand.u32 4294901760, %v4363_v52 }
0x172e   :  { %5981 = vmatmul.mubr.f32.gmra.mrb[54].mxu0 %v4364_v56  ;;  %v4365_v57 = vsub.f32 %v4363_v52, %v4364_v56 }
0x172f   :  { %5991 = vmatprep.mubr.f32.mxu0 %v6802_v17 }
0x1730   :  { %v4366_v48 = vand.u32 4294901760, %v4365_v57 }
0x1732   :  { %5921 = vmatmul.mubr.f32.gmra.mrb[54].mxu1 %v4366_v48  ;;  %5992 = vmatmul.mubr.f32.vlgmr.msra.gmra.mrb[48].mxu0 %v6865_v2 }
0x1733   :  { %5931 = vmatprep.mubr.f32.mxu1 %v6802_v17  ;;  %5994 = vmatprep.mubr.f32.mxu0 %v6928_v54 }
0x1734   :  { %6354 = vmatpush3.bf16.msra.mxu0 %v7212_v25 }
0x1735   :  { %6356 = vmatprep.subr.bf16.mxu0 %v7228_v26 }
0x1736   :  { %5932 = vmatmul.mubr.f32.vlgmr.msra.gmra.mrb[48].mxu1 %v6865_v2  ;;  %5995 = vmatmul.mubr.f32.gmra.mrb[50].mxu0 %v6991_v49 }
0x1737   :  { %6330 = vmatpush3.bf16.msra.mxu1 %v6327_v32  ;;  %5934 = vmatprep.mubr.f32.mxu1 %v6928_v54 }
0x1738   :  { %5997 = vmatprep.mubr.f32.mxu0 %v7054_v47  ;;  %6332 = vmatprep.subr.bf16.mxu1 %v6331_v12 }
0x1739   :  { %6358 = vmatpush3.bf16.msra.mxu0 %v7228_v26 }
0x173a   :  { %5935 = vmatmul.mubr.f32.gmra.mrb[50].mxu1 %v6991_v49  ;;  %5998 = vmatmul.mubr.f32.gmra.mrb[52].mxu0 %v7117_v61 }
0x173b   :  { %5937 = vmatprep.mubr.f32.mxu1 %v7054_v47  ;;  %6000 = vmatprep.mubr.f32.mxu0 %v7180_v9 }
0x173c   :  { %6334 = vmatpush3.bf16.msra.mxu1 %v6331_v12 }
0x173e   :  { %5938 = vmatmul.mubr.f32.gmra.mrb[52].mxu1 %v7117_v61  ;;  %6001 = vmatmul.mubr.f32.gmra.mrb[54].mxu0 %v4362_v58 }
0x173f   :  { %5940 = vmatprep.mubr.f32.mxu1 %v7180_v9  ;;  %6011 = vmatprep.mubr.f32.mxu0 %v6802_v17 }
0x1742   :  { %5941 = vmatmul.mubr.f32.gmra.mrb[54].mxu1 %v4362_v58  ;;  %6012 = vmatmul.mubr.f32.vlgmr.msra.gmra.mrb[48].mxu0 %v6865_v2 }
0x1743   :  { %5951 = vmatprep.mubr.f32.mxu1 %v6805_v19  ;;  %6014 = vmatprep.mubr.f32.mxu0 %v6928_v54 }
0x1746   :  { %5952 = vmatmul.mubr.f32.vlgmr.msra.gmra.mrb[48].mxu1 %v6868_v3  ;;  %6015 = vmatmul.mubr.f32.gmra.mrb[50].mxu0 %v6991_v49 }
0x1747   :  { %5954 = vmatprep.mubr.f32.mxu1 %v6931_v55  ;;  %6017 = vmatprep.mubr.f32.mxu0 %v7054_v47 }
0x174a   :  { %5955 = vmatmul.mubr.f32.gmra.mrb[50].mxu1 %v6994_v50  ;;  %6018 = vmatmul.mubr.f32.gmra.mrb[52].mxu0 %v7117_v61 }
0x174b   :  { %5957 = vmatprep.mubr.f32.mxu1 %v7057_v51  ;;  %6020 = vmatprep.mubr.f32.mxu0 %v7180_v9 }
0x174e   :  { %5958 = vmatmul.mubr.f32.gmra.mrb[52].mxu1 %v7120_v62  ;;  %6021 = vmatmul.mubr.f32.gmra.mrb[54].mxu0 %v4362_v58 }
0x174f   :  { %5960 = vmatprep.mubr.f32.mxu1 %v7183_v10 }
0x1752   :  { %5961 = vmatmul.mubr.f32.gmra.mrb[54].mxu1 %v4363_v52 }
0x1753   :  { %6562 = shalt.err (!%p6559_p0)
}
0x1754   :  { %s6563_s18 = scalar_lea.hbm %s7356_s5, 128 }
0x1755   :  { %p6564_p1 = scmp.ne.s32.totalorder %s7356_s5, %s6563_s18  ;;  %p6567_p2 = scmp.lt.u32.totalorder %s6563_s18, %s7356_s5 }
0x1757   :  { %p6569_p3 = pnand %p6567_p2, %p6564_p1 }
0x1759   :  { %6572 = shalt.err (!%p6569_p3)
}
0x175a   :  { %5038 = dma.vmem_to_hbm [thread:$0]  %s5036_s14, 128, %s7356_s5, [#allocation10]  }
0x175b   :  { %s6637_s25 = smov [#allocation11]  }
0x175c   :  { %s5045_s26 = sshll.u32 %s6637_s25, 4  ;;  %s5046_s26 = int_to_ptr.vmem [resolvable:$true] %s5045_s26 }
0x175d   :  { %s6573_s27 = scalar_lea.vmem %s5046_s26, 128  ;;  %p6578_p5 = scmp.lt.s32.totalorder %s5046_s26, %s5046_s26 }
0x175e   :  { %p6574_p4 = scmp.ne.s32.totalorder %s5046_s26, %s6573_s27  ;;  %p6579_p6 = scmp.lt.s32.totalorder %s6573_s27, %s6573_s27 }
0x1760   :  { %p6580_p7 = por %p6579_p6, %p6578_p5 }
0x1762   :  { %p6581_p8 = pnand %p6580_p7, %p6574_p4 }
0x1764   :  { %6584 = shalt.err (!%p6581_p8)
}
0x1765   :  { %s6585_s30 = scalar_lea.hbm %s7357_s6, 128 }
0x1766   :  { %p6586_p9 = scmp.ne.s32.totalorder %s7357_s6, %s6585_s30  ;;  %p6589_p10 = scmp.lt.u32.totalorder %s6585_s30, %s7357_s6 }
0x1768   :  { %p6591_p11 = pnand %p6589_p10, %p6586_p9 }
0x176a   :  { %6594 = shalt.err (!%p6591_p11)
}
0x176b   :  { %5048 = dma.vmem_to_hbm [thread:$0]  %s5046_s26, 128, %s7357_s6, [#allocation10]   ;;  %v5062_v2 = vld [vmem:[%s7354_s3] ss:$0 sm:$0xff] }
0x176c   :  { %s6638_s3 = smov [#allocation8]  }
0x176d   :  { %s5022_s6 = sshll.u32 %s6638_s3, 4  ;;  %s5023_s6 = int_to_ptr.vmem [resolvable:$true] %s5022_s6 }
0x176e   :  { %s6595_s13 = scalar_lea.vmem %s5023_s6, 1024  ;;  %p6600_p13 = scmp.lt.s32.totalorder %s5023_s6, %s5023_s6 }
0x176f   :  { %p6596_p12 = scmp.ne.s32.totalorder %s5023_s6, %s6595_s13  ;;  %p6601_p0 = scmp.lt.s32.totalorder %s6595_s13, %s6595_s13 }
0x1771   :  { %p6602_p1 = por %p6601_p0, %p6600_p13 }
0x1773   :  { %p6603_p2 = pnand %p6602_p1, %p6596_p12 }
0x1815   :  { %v6013_v17 = vpop.f32.mrb[48].mxu0 }
0x1816   :  { %v4963_v19 = vpop.f32.mrb[49].mxu0 }
0x1819   :  { %v5953_v3 = vpop.f32.mrb[48].mxu1  ;;  %v6016_v54 = vpop.f32.mrb[50].mxu0 }
0x181a   :  { %v6359_v55 = vadd.f32 %v5953_v3, %v5062_v2  ;;  %v4581_v49 = vpop.f32.mrb[49].mxu1  ;;  %v4975_v50 = vpop.f32.mrb[51].mxu0 }
0x181b   :  { %v6361_v47 = vadd.f32 %v5062_v2, %v4581_v49 }
0x181c   :  { %v6360_v51 = vadd.f32 %v6359_v55, %v6013_v17 }
0x181d   :  { %v6362_v61 = vadd.f32 %v6361_v47, %v4963_v19  ;;  %v5956_v62 = vpop.f32.mrb[50].mxu1  ;;  %v6019_v9 = vpop.f32.mrb[52].mxu0 }
0x181e   :  { %5010 = vst [vmem:[#allocation8 + $0x8] sm:$0xff] %v6360_v51  ;;  %v6363_v10 = vadd.f32 %v5956_v62, %v5062_v2  ;;  %v4595_v25 = vpop.f32.mrb[51].mxu1  ;;  %v4987_v26 = vpop.f32.mrb[53].mxu0 }
0x181f   :  { %5009 = vst [vmem:[#allocation8] sm:$0xff] %v6362_v61  ;;  %v6365_v5 = vadd.f32 %v5062_v2, %v4595_v25 }
0x1820   :  { %v6364_v42 = vadd.f32 %v6363_v10, %v6016_v54 }
0x1821   :  { %v6366_v27 = vadd.f32 %v6365_v5, %v4975_v50  ;;  %v5959_v36 = vpop.f32.mrb[52].mxu1  ;;  %v6022_v28 = vpop.f32.mrb[54].mxu0 }
0x1822   :  { %5012 = vst [vmem:[#allocation8 + $0x18] sm:$0xff] %v6364_v42  ;;  %v6367_v29 = vadd.f32 %v5959_v36, %v5062_v2  ;;  %v4609_v30 = vpop.f32.mrb[53].mxu1  ;;  %v4999_v31 = vpop.f32.mrb[55].mxu0 }
0x1823   :  { %5011 = vst [vmem:[#allocation8 + $0x10] sm:$0xff] %v6366_v27  ;;  %v6369_v33 = vadd.f32 %v5062_v2, %v4609_v30 }
0x1824   :  { %v6368_v34 = vadd.f32 %v6367_v29, %v6019_v9 }
0x1825   :  { %v6370_v41 = vadd.f32 %v6369_v33, %v4987_v26  ;;  %v5962_v43 = vpop.f32.mrb[54].mxu1 }
0x1826   :  { %5014 = vst [vmem:[#allocation8 + $0x28] sm:$0xff] %v6368_v34  ;;  %v6371_v45 = vadd.f32 %v5962_v43, %v5062_v2  ;;  %v4623_v46 = vpop.f32.mrb[55].mxu1 }
0x1827   :  { %5013 = vst [vmem:[#allocation8 + $0x20] sm:$0xff] %v6370_v41  ;;  %v6373_v53 = vadd.f32 %v5062_v2, %v4623_v46 }
0x1828   :  { %v6372_v59 = vadd.f32 %v6371_v45, %v6022_v28 }
0x1829   :  { %v6374_v63 = vadd.f32 %v6373_v53, %v4999_v31 }
0x182a   :  { %5016 = vst [vmem:[#allocation8 + $0x38] sm:$0xff] %v6372_v59 }
0x182b   :  { %5015 = vst [vmem:[#allocation8 + $0x30] sm:$0xff] %v6374_v63 }
0x182c   :  { %6606 = shalt.err (!%p6603_p2)
}
0x182d   :  { %s6607_s16 = scalar_lea.hbm %s7355_s4, 1024 }
0x182e   :  { %p6608_p3 = scmp.ne.s32.totalorder %s7355_s4, %s6607_s16  ;;  %p6611_p4 = scmp.lt.u32.totalorder %s6607_s16, %s7355_s4 }
0x1830   :  { %p6613_p5 = pnand %p6611_p4, %p6608_p3 }
0x1832   :  { %6616 = shalt.err (!%p6613_p5)
}
0x1833   :  { %5028 = dma.vmem_to_hbm [thread:$0]  %s5023_s6, 1024, %s7355_s4, [#allocation4], %s6627_s9, %s6627_s9, %s6628_s10  }
0x1834   :  { %6621 = dma.done.wait [#allocation4], 1024  }
0x1835   :  { %6622 = vsyncadd [#allocation4], 4294966272 }
0x1836   :  { %6623 = dma.done.wait [#allocation10], 256  }
0x1837   :  { %6624 = vsyncadd [#allocation10], 4294967040 }
0x1838   :  { %5058 = vsyncpa [#allocation3], 1 }
0x1839   :  { %5059 = vsyncpa [#allocation6], 1 }
0x183a   :  { %5060 = vsyncpa [#allocation4], 1 }
0x183b   :  { %5061 = vsyncpa [#allocation10], 1 }

</bundles_post_ra>
